<compile_context>
chip_gen: v7x
topology: tpu7x:2x2x1
jax: 0.10.0
libtpu: 0.0.40
codegen_flags: <defaults>
</compile_context>

<pallas_src>
import jax
import jax.numpy as jnp
from jax import lax
from jax.experimental import pallas as pl
from jax.experimental.pallas import tpu as pltpu


def _downsample_kernel(xf_ref, w1_ref, a0_ref, b1_ref, a1_ref, w2t_ref, b2_ref,
                       o_ref, lhs1_ref, lhs2_ref, y1pad_ref):
    """Fused PReLU -> conv3x3/s2 -> PReLU -> conv3x3/s1 for one batch block."""
    Bb, HpP, Wp, C0 = xf_ref.shape
    Hp = HpP // 4                       # folded (padded) rows per stride-2 phase
    C1 = w1_ref.shape[1]
    C2 = w2t_ref.shape[0]
    Ho = y1pad_ref.shape[1] - 2
    Wo = y1pad_ref.shape[2] - 2
    M = Bb * Ho * Wo

    # PReLU(a0) applied ONCE to the whole folded band in f32, down-cast to
    # bf16 once.  (PReLU(0) == 0, so the zero padding folded into the band
    # stays zero.)
    xa = xf_ref[...].astype(jnp.float32)                  # (Bb, 4*Hp, Wp, C0)
    a0 = a0_ref[...]                                      # (1, C0)
    xa = jnp.where(xa >= 0.0, xa, a0 * xa).astype(jnp.bfloat16)

    # ---- stage 1: Conv2d(C0->C1, 3x3, stride=2, pad=1) --------------------
    # Stack the 9 stride-2 taps along K into (M, 9*C0), then ONE dot (K=36).
    for ky in range(3):
        for kx in range(3):
            t = ky * 3 + kx
            p = (ky % 2) * 2 + (kx % 2)                   # stride-2 phase
            rs = p * Hp + ky // 2
            cs = kx // 2
            tap = xa[:, rs:rs + Ho, cs:cs + Wo, :]        # (Bb, Ho, Wo, C0)
            lhs1_ref[:, t * C0:(t + 1) * C0] = tap.reshape(M, C0)
    y1 = jnp.dot(lhs1_ref[...], w1_ref[...],
                 preferred_element_type=jnp.float32)      # (M, C1)

    # Stage-1 epilogue: bias + the NEXT stage's PReLU, fused (stays in VMEM).
    y1 = y1 + b1_ref[...]
    a1 = a1_ref[...]
    y1 = jnp.where(y1 >= 0.0, y1, a1 * y1).astype(jnp.bfloat16)

    # Zero-padded bf16 VMEM scratch for the stride-1 conv: write only the
    # 1-pixel border (4 thin slabs) + the interior; no full-scratch zeroing,
    # no HBM round trip of y1.
    zrow = jnp.zeros((Bb, 1, Wo + 2, C1), jnp.bfloat16)
    zcol = jnp.zeros((Bb, Ho, 1, C1), jnp.bfloat16)
    y1pad_ref[:, 0:1, :, :] = zrow
    y1pad_ref[:, Ho + 1:Ho + 2, :, :] = zrow
    y1pad_ref[:, 1:1 + Ho, 0:1, :] = zcol
    y1pad_ref[:, 1:1 + Ho, Wo + 1:Wo + 2, :] = zcol
    y1pad_ref[:, 1:1 + Ho, 1:1 + Wo, :] = y1.reshape(Bb, Ho, Wo, C1)

    # ---- stage 2: Conv2d(C1->C2, 3x3, stride=1, pad=1) --------------------
    # Stack the 9 taps along K into (M, 9*C1), then ONE transposed dot
    # (w2t (C2, 9*C1) x lhs2 (M, 9*C1) -> (C2, M)) so the output store is
    # lane-dense (spatial in the lane axis).
    for ky in range(3):
        for kx in range(3):
            t = ky * 3 + kx
            tap = y1pad_ref[:, ky:ky + Ho, kx:kx + Wo, :]  # (Bb, Ho, Wo, C1)
            lhs2_ref[:, t * C1:(t + 1) * C1] = tap.reshape(M, C1)
    y2t = lax.dot_general(w2t_ref[...], lhs2_ref[...],
                          dimension_numbers=(((1,), (1,)), ((), ())),
                          preferred_element_type=jnp.float32)   # (C2, M)
    o_ref[0] = y2t + b2_ref[...]


def _pick_bb(B):
    """Largest divisor of B that still leaves >= 2 grid steps (for 2 TCs)."""
    if B < 2:
        return 1
    for bb in range(B // 2, 0, -1):
        if B % bb == 0:
            return bb
    return 1


def _downsample_call(xf, w1g, a0, b1, a1, w2t, b2, Bb, Ho, Wo):
    B, HpP, Wp, C0 = xf.shape                              # HpP = 4 * Hp
    C1 = w1g.shape[1]
    C2 = w2t.shape[0]
    nb = B // Bb
    M = Bb * Ho * Wo
    return pl.pallas_call(
        _downsample_kernel,
        out_shape=jax.ShapeDtypeStruct((nb, C2, M), jnp.float32),
        grid_spec=pltpu.PrefetchScalarGridSpec(
            num_scalar_prefetch=0,
            grid=(nb,),
            in_specs=[
                pl.BlockSpec((Bb, HpP, Wp, C0), lambda b: (b, 0, 0, 0)),
                pl.BlockSpec((9 * C0, C1), lambda b: (0, 0)),
                pl.BlockSpec((1, C0), lambda b: (0, 0)),
                pl.BlockSpec((1, C1), lambda b: (0, 0)),
                pl.BlockSpec((1, C1), lambda b: (0, 0)),
                pl.BlockSpec((C2, 9 * C1), lambda b: (0, 0)),
                pl.BlockSpec((C2, 1), lambda b: (0, 0)),
            ],
            out_specs=pl.BlockSpec((1, C2, M), lambda b: (b, 0, 0)),
            scratch_shapes=[
                pltpu.VMEM((M, 9 * C0), jnp.bfloat16),      # stage-1 stacked taps
                pltpu.VMEM((M, 9 * C1), jnp.bfloat16),      # stage-2 stacked taps
                pltpu.VMEM((Bb, Ho + 2, Wo + 2, C1), jnp.bfloat16),  # padded y1
            ],
        ),
        compiler_params=pltpu.CompilerParams(
            dimension_semantics=("parallel",),
            vmem_limit_bytes=32 * 1024 * 1024,
        ),
    )(xf, w1g, a0, b1, a1, w2t, b2)


def downsample_forward(x_nchw, params):
    """Semantics of Downsample.forward: PReLU -> Conv(s2) -> PReLU -> Conv(s1)."""
    a0, w1, b1, a1, w2, b2 = params
    B, C0, H, W = x_nchw.shape
    assert H % 2 == 0 and W % 2 == 0, "fused Downsample kernel expects even H, W"
    C1, C2 = w1.shape[0], w2.shape[0]
    Ho, Wo = H // 2, W // 2
    Hp, Wp = (H + 2) // 2, (W + 2) // 2
    Bb = _pick_bb(B)
    nb = B // Bb

    # NCHW -> NHWC, zero-pad by 1, then space-to-depth fold the stride-2
    # phases into the leading row axis:
    #   xf[b, p*Hp + I, J, c] = xpad[b, 2*I + p//2, 2*J + p%2, c]
    x = jnp.transpose(x_nchw, (0, 2, 3, 1))
    xp = jnp.pad(x, ((0, 0), (1, 1), (1, 1), (0, 0)))
    xf = xp.reshape(B, Hp, 2, Wp, 2, C0).transpose(0, 2, 4, 1, 3, 5)
    xf = xf.reshape(B, 4 * Hp, Wp, C0).astype(jnp.bfloat16)

    # Stage-1 weights: (Cout,Cin,kh,kw) -> (kh*kw*Cin, Cout); row = tap*C0+cin.
    w1g = jnp.transpose(w1, (2, 3, 1, 0)).reshape(9 * C0, C1).astype(jnp.bfloat16)
    # Stage-2 weights pre-transposed: (Cout, kh*kw*Cin); col = tap*C1+cin.
    w2t = jnp.transpose(w2, (0, 2, 3, 1)).reshape(C2, 9 * C1).astype(jnp.bfloat16)

    y = _downsample_call(
        xf, w1g,
        a0.reshape(1, C0).astype(jnp.float32),
        b1.reshape(1, C1).astype(jnp.float32),
        a1.reshape(1, C1).astype(jnp.float32),
        w2t,
        b2.reshape(C2, 1).astype(jnp.float32),
        Bb, Ho, Wo)                                        # (nb, C2, Bb*Ho*Wo)

    # Layout plumbing only: (nb, C2, Bb*Ho*Wo) -> (B, C2, Ho, Wo)
    y = y.reshape(nb, C2, Bb, Ho, Wo).transpose(0, 2, 1, 3, 4)
    return y.reshape(B, C2, Ho, Wo)


def _ref_forward(x, params):
    """Pure-JAX f32 reference mirroring the PyTorch module."""
    a0, w1, b1, a1, w2, b2 = params

    def prelu(t, a):
        return jnp.where(t >= 0, t, a.reshape(1, -1, 1, 1) * t)

    def conv(t, w, b, stride):
        y = lax.conv_general_dilated(
            t, w, (stride, stride), ((1, 1), (1, 1)),
            dimension_numbers=("NCHW", "OIHW", "NCHW"))
        return y + b.reshape(1, -1, 1, 1)

    x = conv(prelu(x, a0), w1, b1, 2)
    x = conv(prelu(x, a1), w2, b2, 1)
    return x


if __name__ == "__main__":
    B, C0, C1, C2, H, W = 2, 4, 8, 8, 16, 16   # intChannels = [4, 8, 8]
    key = jax.random.PRNGKey(0)
    ks = jax.random.split(key, 5)

    x = jax.random.normal(ks[0], (B, C0, H, W), jnp.float32)

    # deterministic synthetic parameters (shapes from the module's __init__)
    a0 = jnp.full((C0,), 0.25, jnp.float32)                       # PReLU init=0.25
    w1 = 0.1 * jax.random.normal(ks[1], (C1, C0, 3, 3), jnp.float32)
    b1 = 0.1 * jax.random.normal(ks[2], (C1,), jnp.float32)
    a1 = jnp.full((C1,), 0.25, jnp.float32)
    w2 = 0.1 * jax.random.normal(ks[3], (C2, C1, 3, 3), jnp.float32)
    b2 = 0.1 * jax.random.normal(ks[4], (C2,), jnp.float32)
    params = (a0, w1, b1, a1, w2, b2)

    fwd = jax.jit(downsample_forward)
    out = jax.block_until_ready(fwd(x, params))

    ref = _ref_forward(x, params)
    assert out.shape == (B, C2, H // 2, W // 2), out.shape
    # bf16 activations/weights in the kernel vs f32 reference -> loose tolerance.
    max_err = float(jnp.max(jnp.abs(out - ref)))
    assert jnp.allclose(out, ref, atol=5e-2, rtol=5e-2), max_err

    print("KERNEL_OK")
</pallas_src>

<mosaic_0001>
module attributes {stable_mosaic.version = 11 : i64} {
  func.func @_downsample_kernel(%arg0: i32, %arg1: memref<1x36x9x4xbf16, #tpu.memory_space<vmem>>, %arg2: memref<36x8xbf16, #tpu.memory_space<vmem>>, %arg3: memref<1x4xf32, #tpu.memory_space<vmem>>, %arg4: memref<1x8xf32, #tpu.memory_space<vmem>>, %arg5: memref<1x8xf32, #tpu.memory_space<vmem>>, %arg6: memref<8x72xbf16, #tpu.memory_space<vmem>>, %arg7: memref<8x1xf32, #tpu.memory_space<vmem>>, %arg8: memref<1x8x64xf32, #tpu.memory_space<vmem>>, %arg9: memref<64x36xbf16, #tpu.memory_space<vmem>>, %arg10: memref<64x72xbf16, #tpu.memory_space<vmem>>, %arg11: memref<1x10x10x8xbf16, #tpu.memory_space<vmem>>) attributes {dimension_semantics = [#tpu.dimension_semantics<parallel>], iteration_bounds = array<i64: 2>, scalar_prefetch = 0 : i64, scratch_operands = 3 : i64, tpu.core_type = #tpu.core_type<tc>, window_params = [{transform_indices = @transform_0, window_bounds = array<i64: 1, 36, 9, 4>}, {pipeline_mode = #tpu.pipeline_mode<synchronous>, transform_indices = @transform_1, window_bounds = array<i64: 36, 8>}, {pipeline_mode = #tpu.pipeline_mode<synchronous>, transform_indices = @transform_2, window_bounds = array<i64: 1, 4>}, {pipeline_mode = #tpu.pipeline_mode<synchronous>, transform_indices = @transform_3, window_bounds = array<i64: 1, 8>}, {pipeline_mode = #tpu.pipeline_mode<synchronous>, transform_indices = @transform_4, window_bounds = array<i64: 1, 8>}, {pipeline_mode = #tpu.pipeline_mode<synchronous>, transform_indices = @transform_5, window_bounds = array<i64: 8, 72>}, {pipeline_mode = #tpu.pipeline_mode<synchronous>, transform_indices = @transform_6, window_bounds = array<i64: 8, 1>}, {transform_indices = @transform_7, window_bounds = array<i64: 1, 8, 64>}]} {
    %c0 = arith.constant 0 : index
    %c0_0 = arith.constant 0 : index
    %c0_1 = arith.constant 0 : index
    %c0_2 = arith.constant 0 : index
    %0 = vector.load %arg1[%c0, %c0_0, %c0_1, %c0_2] : memref<1x36x9x4xbf16, #tpu.memory_space<vmem>>, vector<1x36x9x4xbf16>
    %1 = arith.extf %0 : vector<1x36x9x4xbf16> to vector<1x36x9x4xf32>
    %c0_3 = arith.constant 0 : index
    %c0_4 = arith.constant 0 : index
    %2 = vector.load %arg3[%c0_3, %c0_4] : memref<1x4xf32, #tpu.memory_space<vmem>>, vector<1x4xf32>
    %cst = arith.constant 0.000000e+00 : f32
    %3 = vector.broadcast %cst : f32 to vector<1x36x9x4xf32>
    %4 = arith.cmpf oge, %1, %3 : vector<1x36x9x4xf32>
    %5 = vector.shape_cast %2 : vector<1x4xf32> to vector<1x1x1x4xf32>
    %6 = vector.broadcast %5 : vector<1x1x1x4xf32> to vector<1x36x9x4xf32>
    %7 = arith.mulf %6, %1 : vector<1x36x9x4xf32>
    %8 = arith.select %4, %1, %7 : vector<1x36x9x4xi1>, vector<1x36x9x4xf32>
    %9 = arith.truncf %8 : vector<1x36x9x4xf32> to vector<1x36x9x4xbf16>
    %10 = vector.extract_strided_slice %9 {offsets = [0, 0, 0, 0], sizes = [1, 8, 8, 4], strides = [1, 1, 1, 1]} : vector<1x36x9x4xbf16> to vector<1x8x8x4xbf16>
    %11 = vector.shape_cast %10 : vector<1x8x8x4xbf16> to vector<64x4xbf16>
    %c0_5 = arith.constant 0 : index
    %c0_6 = arith.constant 0 : index
    %12 = vector.load %arg9[%c0_5, %c0_6] : memref<64x36xbf16, #tpu.memory_space<vmem>>, vector<64x4xbf16>
    tpu.vector_store %arg9[%c0_5, %c0_6], %11 {strides = array<i32>} : memref<64x36xbf16, #tpu.memory_space<vmem>>, vector<64x4xbf16>,
    %13 = vector.extract_strided_slice %9 {offsets = [0, 9, 0, 0], sizes = [1, 8, 8, 4], strides = [1, 1, 1, 1]} : vector<1x36x9x4xbf16> to vector<1x8x8x4xbf16>
    %14 = vector.shape_cast %13 : vector<1x8x8x4xbf16> to vector<64x4xbf16>
    %c0_7 = arith.constant 0 : index
    %c4 = arith.constant 4 : index
    %15 = vector.load %arg9[%c0_7, %c4] : memref<64x36xbf16, #tpu.memory_space<vmem>>, vector<64x4xbf16>
    tpu.vector_store %arg9[%c0_7, %c4], %14 {strides = array<i32>} : memref<64x36xbf16, #tpu.memory_space<vmem>>, vector<64x4xbf16>,
    %16 = vector.extract_strided_slice %9 {offsets = [0, 0, 1, 0], sizes = [1, 8, 8, 4], strides = [1, 1, 1, 1]} : vector<1x36x9x4xbf16> to vector<1x8x8x4xbf16>
    %17 = vector.shape_cast %16 : vector<1x8x8x4xbf16> to vector<64x4xbf16>
    %c0_8 = arith.constant 0 : index
    %c8 = arith.constant 8 : index
    %18 = vector.load %arg9[%c0_8, %c8] : memref<64x36xbf16, #tpu.memory_space<vmem>>, vector<64x4xbf16>
    tpu.vector_store %arg9[%c0_8, %c8], %17 {strides = array<i32>} : memref<64x36xbf16, #tpu.memory_space<vmem>>, vector<64x4xbf16>,
    %19 = vector.extract_strided_slice %9 {offsets = [0, 18, 0, 0], sizes = [1, 8, 8, 4], strides = [1, 1, 1, 1]} : vector<1x36x9x4xbf16> to vector<1x8x8x4xbf16>
    %20 = vector.shape_cast %19 : vector<1x8x8x4xbf16> to vector<64x4xbf16>
    %c0_9 = arith.constant 0 : index
    %c12 = arith.constant 12 : index
    %21 = vector.load %arg9[%c0_9, %c12] : memref<64x36xbf16, #tpu.memory_space<vmem>>, vector<64x4xbf16>
    tpu.vector_store %arg9[%c0_9, %c12], %20 {strides = array<i32>} : memref<64x36xbf16, #tpu.memory_space<vmem>>, vector<64x4xbf16>,
    %22 = vector.extract_strided_slice %9 {offsets = [0, 27, 0, 0], sizes = [1, 8, 8, 4], strides = [1, 1, 1, 1]} : vector<1x36x9x4xbf16> to vector<1x8x8x4xbf16>
    %23 = vector.shape_cast %22 : vector<1x8x8x4xbf16> to vector<64x4xbf16>
    %c0_10 = arith.constant 0 : index
    %c16 = arith.constant 16 : index
    %24 = vector.load %arg9[%c0_10, %c16] : memref<64x36xbf16, #tpu.memory_space<vmem>>, vector<64x4xbf16>
    tpu.vector_store %arg9[%c0_10, %c16], %23 {strides = array<i32>} : memref<64x36xbf16, #tpu.memory_space<vmem>>, vector<64x4xbf16>,
    %25 = vector.extract_strided_slice %9 {offsets = [0, 18, 1, 0], sizes = [1, 8, 8, 4], strides = [1, 1, 1, 1]} : vector<1x36x9x4xbf16> to vector<1x8x8x4xbf16>
    %26 = vector.shape_cast %25 : vector<1x8x8x4xbf16> to vector<64x4xbf16>
    %c0_11 = arith.constant 0 : index
    %c20 = arith.constant 20 : index
    %27 = vector.load %arg9[%c0_11, %c20] : memref<64x36xbf16, #tpu.memory_space<vmem>>, vector<64x4xbf16>
    tpu.vector_store %arg9[%c0_11, %c20], %26 {strides = array<i32>} : memref<64x36xbf16, #tpu.memory_space<vmem>>, vector<64x4xbf16>,
    %28 = vector.extract_strided_slice %9 {offsets = [0, 1, 0, 0], sizes = [1, 8, 8, 4], strides = [1, 1, 1, 1]} : vector<1x36x9x4xbf16> to vector<1x8x8x4xbf16>
    %29 = vector.shape_cast %28 : vector<1x8x8x4xbf16> to vector<64x4xbf16>
    %c0_12 = arith.constant 0 : index
    %c24 = arith.constant 24 : index
    %30 = vector.load %arg9[%c0_12, %c24] : memref<64x36xbf16, #tpu.memory_space<vmem>>, vector<64x4xbf16>
    tpu.vector_store %arg9[%c0_12, %c24], %29 {strides = array<i32>} : memref<64x36xbf16, #tpu.memory_space<vmem>>, vector<64x4xbf16>,
    %31 = vector.extract_strided_slice %9 {offsets = [0, 10, 0, 0], sizes = [1, 8, 8, 4], strides = [1, 1, 1, 1]} : vector<1x36x9x4xbf16> to vector<1x8x8x4xbf16>
    %32 = vector.shape_cast %31 : vector<1x8x8x4xbf16> to vector<64x4xbf16>
    %c0_13 = arith.constant 0 : index
    %c28 = arith.constant 28 : index
    %33 = vector.load %arg9[%c0_13, %c28] : memref<64x36xbf16, #tpu.memory_space<vmem>>, vector<64x4xbf16>
    tpu.vector_store %arg9[%c0_13, %c28], %32 {strides = array<i32>} : memref<64x36xbf16, #tpu.memory_space<vmem>>, vector<64x4xbf16>,
    %34 = vector.extract_strided_slice %9 {offsets = [0, 1, 1, 0], sizes = [1, 8, 8, 4], strides = [1, 1, 1, 1]} : vector<1x36x9x4xbf16> to vector<1x8x8x4xbf16>
    %35 = vector.shape_cast %34 : vector<1x8x8x4xbf16> to vector<64x4xbf16>
    %c0_14 = arith.constant 0 : index
    %c32 = arith.constant 32 : index
    %36 = vector.load %arg9[%c0_14, %c32] : memref<64x36xbf16, #tpu.memory_space<vmem>>, vector<64x4xbf16>
    tpu.vector_store %arg9[%c0_14, %c32], %35 {strides = array<i32>} : memref<64x36xbf16, #tpu.memory_space<vmem>>, vector<64x4xbf16>,
    %c0_15 = arith.constant 0 : index
    %c0_16 = arith.constant 0 : index
    %37 = vector.load %arg9[%c0_15, %c0_16] : memref<64x36xbf16, #tpu.memory_space<vmem>>, vector<64x36xbf16>
    %c0_17 = arith.constant 0 : index
    %c0_18 = arith.constant 0 : index
    %38 = vector.load %arg2[%c0_17, %c0_18] : memref<36x8xbf16, #tpu.memory_space<vmem>>, vector<36x8xbf16>
    %cst_19 = arith.constant dense<0.000000e+00> : vector<64x8xf32>
    %39 = tpu.matmul %37, %38, %cst_19 {dimension_numbers = #tpu.dot_dimension_numbers<[1], [0], [0], [1], [0, 0, 1, 1], [], []>} : vector<64x36xbf16>, vector<36x8xbf16>, vector<64x8xf32> -> vector<64x8xf32>
    %c0_20 = arith.constant 0 : index
    %c0_21 = arith.constant 0 : index
    %40 = vector.load %arg4[%c0_20, %c0_21] : memref<1x8xf32, #tpu.memory_space<vmem>>, vector<1x8xf32>
    %41 = vector.broadcast %40 : vector<1x8xf32> to vector<64x8xf32>
    %42 = arith.addf %39, %41 : vector<64x8xf32>
    %c0_22 = arith.constant 0 : index
    %c0_23 = arith.constant 0 : index
    %43 = vector.load %arg5[%c0_22, %c0_23] : memref<1x8xf32, #tpu.memory_space<vmem>>, vector<1x8xf32>
    %cst_24 = arith.constant 0.000000e+00 : f32
    %44 = vector.broadcast %cst_24 : f32 to vector<64x8xf32>
    %45 = arith.cmpf oge, %42, %44 : vector<64x8xf32>
    %46 = vector.broadcast %43 : vector<1x8xf32> to vector<64x8xf32>
    %47 = arith.mulf %46, %42 : vector<64x8xf32>
    %48 = arith.select %45, %42, %47 : vector<64x8xi1>, vector<64x8xf32>
    %49 = arith.truncf %48 : vector<64x8xf32> to vector<64x8xbf16>
    %cst_25 = arith.constant 0.000000e+00 : bf16
    %50 = vector.broadcast %cst_25 : bf16 to vector<1x1x10x8xbf16>
    %cst_26 = arith.constant 0.000000e+00 : bf16
    %51 = vector.broadcast %cst_26 : bf16 to vector<1x8x1x8xbf16>
    %c0_27 = arith.constant 0 : index
    %c0_28 = arith.constant 0 : index
    %c0_29 = arith.constant 0 : index
    %c0_30 = arith.constant 0 : index
    %52 = vector.load %arg11[%c0_27, %c0_28, %c0_29, %c0_30] : memref<1x10x10x8xbf16, #tpu.memory_space<vmem>>, vector<1x1x10x8xbf16>
    tpu.vector_store %arg11[%c0_27, %c0_28, %c0_29, %c0_30], %50 {strides = array<i32>} : memref<1x10x10x8xbf16, #tpu.memory_space<vmem>>, vector<1x1x10x8xbf16>,
    %c0_31 = arith.constant 0 : index
    %c9 = arith.constant 9 : index
    %c0_32 = arith.constant 0 : index
    %c0_33 = arith.constant 0 : index
    %53 = vector.load %arg11[%c0_31, %c9, %c0_32, %c0_33] : memref<1x10x10x8xbf16, #tpu.memory_space<vmem>>, vector<1x1x10x8xbf16>
    tpu.vector_store %arg11[%c0_31, %c9, %c0_32, %c0_33], %50 {strides = array<i32>} : memref<1x10x10x8xbf16, #tpu.memory_space<vmem>>, vector<1x1x10x8xbf16>,
    %c0_34 = arith.constant 0 : index
    %c1 = arith.constant 1 : index
    %c0_35 = arith.constant 0 : index
    %c0_36 = arith.constant 0 : index
    %54 = vector.load %arg11[%c0_34, %c1, %c0_35, %c0_36] : memref<1x10x10x8xbf16, #tpu.memory_space<vmem>>, vector<1x8x1x8xbf16>
    tpu.vector_store %arg11[%c0_34, %c1, %c0_35, %c0_36], %51 {strides = array<i32>} : memref<1x10x10x8xbf16, #tpu.memory_space<vmem>>, vector<1x8x1x8xbf16>,
    %c0_37 = arith.constant 0 : index
    %c1_38 = arith.constant 1 : index
    %c9_39 = arith.constant 9 : index
    %c0_40 = arith.constant 0 : index
    %55 = vector.load %arg11[%c0_37, %c1_38, %c9_39, %c0_40] : memref<1x10x10x8xbf16, #tpu.memory_space<vmem>>, vector<1x8x1x8xbf16>
    tpu.vector_store %arg11[%c0_37, %c1_38, %c9_39, %c0_40], %51 {strides = array<i32>} : memref<1x10x10x8xbf16, #tpu.memory_space<vmem>>, vector<1x8x1x8xbf16>,
    %56 = vector.shape_cast %49 : vector<64x8xbf16> to vector<1x8x8x8xbf16>
    %c0_41 = arith.constant 0 : index
    %c1_42 = arith.constant 1 : index
    %c1_43 = arith.constant 1 : index
    %c0_44 = arith.constant 0 : index
    %57 = vector.load %arg11[%c0_41, %c1_42, %c1_43, %c0_44] : memref<1x10x10x8xbf16, #tpu.memory_space<vmem>>, vector<1x8x8x8xbf16>
    tpu.vector_store %arg11[%c0_41, %c1_42, %c1_43, %c0_44], %56 {strides = array<i32>} : memref<1x10x10x8xbf16, #tpu.memory_space<vmem>>, vector<1x8x8x8xbf16>,
    %c0_45 = arith.constant 0 : index
    %c0_46 = arith.constant 0 : index
    %c0_47 = arith.constant 0 : index
    %c0_48 = arith.constant 0 : index
    %58 = vector.load %arg11[%c0_45, %c0_46, %c0_47, %c0_48] : memref<1x10x10x8xbf16, #tpu.memory_space<vmem>>, vector<1x8x8x8xbf16>
    %59 = vector.shape_cast %58 : vector<1x8x8x8xbf16> to vector<64x8xbf16>
    %c0_49 = arith.constant 0 : index
    %c0_50 = arith.constant 0 : index
    %60 = vector.load %arg10[%c0_49, %c0_50] : memref<64x72xbf16, #tpu.memory_space<vmem>>, vector<64x8xbf16>
    tpu.vector_store %arg10[%c0_49, %c0_50], %59 {strides = array<i32>} : memref<64x72xbf16, #tpu.memory_space<vmem>>, vector<64x8xbf16>,
    %c0_51 = arith.constant 0 : index
    %c0_52 = arith.constant 0 : index
    %c1_53 = arith.constant 1 : index
    %c0_54 = arith.constant 0 : index
    %61 = vector.load %arg11[%c0_51, %c0_52, %c1_53, %c0_54] : memref<1x10x10x8xbf16, #tpu.memory_space<vmem>>, vector<1x8x8x8xbf16>
    %62 = vector.shape_cast %61 : vector<1x8x8x8xbf16> to vector<64x8xbf16>
    %c0_55 = arith.constant 0 : index
    %c8_56 = arith.constant 8 : index
    %63 = vector.load %arg10[%c0_55, %c8_56] : memref<64x72xbf16, #tpu.memory_space<vmem>>, vector<64x8xbf16>
    tpu.vector_store %arg10[%c0_55, %c8_56], %62 {strides = array<i32>} : memref<64x72xbf16, #tpu.memory_space<vmem>>, vector<64x8xbf16>,
    %c0_57 = arith.constant 0 : index
    %c0_58 = arith.constant 0 : index
    %c2 = arith.constant 2 : index
    %c0_59 = arith.constant 0 : index
    %64 = vector.load %arg11[%c0_57, %c0_58, %c2, %c0_59] : memref<1x10x10x8xbf16, #tpu.memory_space<vmem>>, vector<1x8x8x8xbf16>
    %65 = vector.shape_cast %64 : vector<1x8x8x8xbf16> to vector<64x8xbf16>
    %c0_60 = arith.constant 0 : index
    %c16_61 = arith.constant 16 : index
    %66 = vector.load %arg10[%c0_60, %c16_61] : memref<64x72xbf16, #tpu.memory_space<vmem>>, vector<64x8xbf16>
    tpu.vector_store %arg10[%c0_60, %c16_61], %65 {strides = array<i32>} : memref<64x72xbf16, #tpu.memory_space<vmem>>, vector<64x8xbf16>,
    %c0_62 = arith.constant 0 : index
    %c1_63 = arith.constant 1 : index
    %c0_64 = arith.constant 0 : index
    %c0_65 = arith.constant 0 : index
    %67 = vector.load %arg11[%c0_62, %c1_63, %c0_64, %c0_65] : memref<1x10x10x8xbf16, #tpu.memory_space<vmem>>, vector<1x8x8x8xbf16>
    %68 = vector.shape_cast %67 : vector<1x8x8x8xbf16> to vector<64x8xbf16>
    %c0_66 = arith.constant 0 : index
    %c24_67 = arith.constant 24 : index
    %69 = vector.load %arg10[%c0_66, %c24_67] : memref<64x72xbf16, #tpu.memory_space<vmem>>, vector<64x8xbf16>
    tpu.vector_store %arg10[%c0_66, %c24_67], %68 {strides = array<i32>} : memref<64x72xbf16, #tpu.memory_space<vmem>>, vector<64x8xbf16>,
    %c0_68 = arith.constant 0 : index
    %c1_69 = arith.constant 1 : index
    %c1_70 = arith.constant 1 : index
    %c0_71 = arith.constant 0 : index
    %70 = vector.load %arg11[%c0_68, %c1_69, %c1_70, %c0_71] : memref<1x10x10x8xbf16, #tpu.memory_space<vmem>>, vector<1x8x8x8xbf16>
    %71 = vector.shape_cast %70 : vector<1x8x8x8xbf16> to vector<64x8xbf16>
    %c0_72 = arith.constant 0 : index
    %c32_73 = arith.constant 32 : index
    %72 = vector.load %arg10[%c0_72, %c32_73] : memref<64x72xbf16, #tpu.memory_space<vmem>>, vector<64x8xbf16>
    tpu.vector_store %arg10[%c0_72, %c32_73], %71 {strides = array<i32>} : memref<64x72xbf16, #tpu.memory_space<vmem>>, vector<64x8xbf16>,
    %c0_74 = arith.constant 0 : index
    %c1_75 = arith.constant 1 : index
    %c2_76 = arith.constant 2 : index
    %c0_77 = arith.constant 0 : index
    %73 = vector.load %arg11[%c0_74, %c1_75, %c2_76, %c0_77] : memref<1x10x10x8xbf16, #tpu.memory_space<vmem>>, vector<1x8x8x8xbf16>
    %74 = vector.shape_cast %73 : vector<1x8x8x8xbf16> to vector<64x8xbf16>
    %c0_78 = arith.constant 0 : index
    %c40 = arith.constant 40 : index
    %75 = vector.load %arg10[%c0_78, %c40] : memref<64x72xbf16, #tpu.memory_space<vmem>>, vector<64x8xbf16>
    tpu.vector_store %arg10[%c0_78, %c40], %74 {strides = array<i32>} : memref<64x72xbf16, #tpu.memory_space<vmem>>, vector<64x8xbf16>,
    %c0_79 = arith.constant 0 : index
    %c2_80 = arith.constant 2 : index
    %c0_81 = arith.constant 0 : index
    %c0_82 = arith.constant 0 : index
    %76 = vector.load %arg11[%c0_79, %c2_80, %c0_81, %c0_82] : memref<1x10x10x8xbf16, #tpu.memory_space<vmem>>, vector<1x8x8x8xbf16>
    %77 = vector.shape_cast %76 : vector<1x8x8x8xbf16> to vector<64x8xbf16>
    %c0_83 = arith.constant 0 : index
    %c48 = arith.constant 48 : index
    %78 = vector.load %arg10[%c0_83, %c48] : memref<64x72xbf16, #tpu.memory_space<vmem>>, vector<64x8xbf16>
    tpu.vector_store %arg10[%c0_83, %c48], %77 {strides = array<i32>} : memref<64x72xbf16, #tpu.memory_space<vmem>>, vector<64x8xbf16>,
    %c0_84 = arith.constant 0 : index
    %c2_85 = arith.constant 2 : index
    %c1_86 = arith.constant 1 : index
    %c0_87 = arith.constant 0 : index
    %79 = vector.load %arg11[%c0_84, %c2_85, %c1_86, %c0_87] : memref<1x10x10x8xbf16, #tpu.memory_space<vmem>>, vector<1x8x8x8xbf16>
    %80 = vector.shape_cast %79 : vector<1x8x8x8xbf16> to vector<64x8xbf16>
    %c0_88 = arith.constant 0 : index
    %c56 = arith.constant 56 : index
    %81 = vector.load %arg10[%c0_88, %c56] : memref<64x72xbf16, #tpu.memory_space<vmem>>, vector<64x8xbf16>
    tpu.vector_store %arg10[%c0_88, %c56], %80 {strides = array<i32>} : memref<64x72xbf16, #tpu.memory_space<vmem>>, vector<64x8xbf16>,
    %c0_89 = arith.constant 0 : index
    %c2_90 = arith.constant 2 : index
    %c2_91 = arith.constant 2 : index
    %c0_92 = arith.constant 0 : index
    %82 = vector.load %arg11[%c0_89, %c2_90, %c2_91, %c0_92] : memref<1x10x10x8xbf16, #tpu.memory_space<vmem>>, vector<1x8x8x8xbf16>
    %83 = vector.shape_cast %82 : vector<1x8x8x8xbf16> to vector<64x8xbf16>
    %c0_93 = arith.constant 0 : index
    %c64 = arith.constant 64 : index
    %84 = vector.load %arg10[%c0_93, %c64] : memref<64x72xbf16, #tpu.memory_space<vmem>>, vector<64x8xbf16>
    tpu.vector_store %arg10[%c0_93, %c64], %83 {strides = array<i32>} : memref<64x72xbf16, #tpu.memory_space<vmem>>, vector<64x8xbf16>,
    %c0_94 = arith.constant 0 : index
    %c0_95 = arith.constant 0 : index
    %85 = vector.load %arg6[%c0_94, %c0_95] : memref<8x72xbf16, #tpu.memory_space<vmem>>, vector<8x72xbf16>
    %c0_96 = arith.constant 0 : index
    %c0_97 = arith.constant 0 : index
    %86 = vector.load %arg10[%c0_96, %c0_97] : memref<64x72xbf16, #tpu.memory_space<vmem>>, vector<64x72xbf16>
    %cst_98 = arith.constant dense<0.000000e+00> : vector<8x64xf32>
    %87 = tpu.matmul %85, %86, %cst_98 {dimension_numbers = #tpu.dot_dimension_numbers<[1], [1], [0], [0], [0, 0, 1, 0], [], []>} : vector<8x72xbf16>, vector<64x72xbf16>, vector<8x64xf32> -> vector<8x64xf32>
    %c0_99 = arith.constant 0 : index
    %c0_100 = arith.constant 0 : index
    %88 = vector.load %arg7[%c0_99, %c0_100] : memref<8x1xf32, #tpu.memory_space<vmem>>, vector<8x1xf32>
    %89 = vector.broadcast %88 : vector<8x1xf32> to vector<8x64xf32>
    %90 = arith.addf %87, %89 : vector<8x64xf32>
    %c0_101 = arith.constant 0 : index
    %c0_102 = arith.constant 0 : index
    %c0_103 = arith.constant 0 : index
    %91 = vector.load %arg8[%c0_101, %c0_102, %c0_103] : memref<1x8x64xf32, #tpu.memory_space<vmem>>, vector<1x8x64xf32>
    %92 = vector.shape_cast %91 : vector<1x8x64xf32> to vector<8x64xf32>
    %93 = vector.shape_cast %90 : vector<8x64xf32> to vector<1x8x64xf32>
    tpu.vector_store %arg8[%c0_101, %c0_102, %c0_103], %93 {strides = array<i32>} : memref<1x8x64xf32, #tpu.memory_space<vmem>>, vector<1x8x64xf32>,
    return
  }
  func.func @transform_0(%arg0: i32) -> (i32, i32, i32, i32) {
    %c0_i32 = arith.constant 0 : i32
    %c0_i32_0 = arith.constant 0 : i32
    %c0_i32_1 = arith.constant 0 : i32
    %c0_i32_2 = arith.constant 0 : i32
    return %arg0, %c0_i32, %c0_i32_0, %c0_i32_1 : i32, i32, i32, i32
  }
  func.func @transform_1(%arg0: i32) -> (i32, i32) {
    %c0_i32 = arith.constant 0 : i32
    %c0_i32_0 = arith.constant 0 : i32
    %c0_i32_1 = arith.constant 0 : i32
    return %c0_i32, %c0_i32_0 : i32, i32
  }
  func.func @transform_2(%arg0: i32) -> (i32, i32) {
    %c0_i32 = arith.constant 0 : i32
    %c0_i32_0 = arith.constant 0 : i32
    %c0_i32_1 = arith.constant 0 : i32
    return %c0_i32, %c0_i32_0 : i32, i32
  }
  func.func @transform_3(%arg0: i32) -> (i32, i32) {
    %c0_i32 = arith.constant 0 : i32
    %c0_i32_0 = arith.constant 0 : i32
    %c0_i32_1 = arith.constant 0 : i32
    return %c0_i32, %c0_i32_0 : i32, i32
  }
  func.func @transform_4(%arg0: i32) -> (i32, i32) {
    %c0_i32 = arith.constant 0 : i32
    %c0_i32_0 = arith.constant 0 : i32
    %c0_i32_1 = arith.constant 0 : i32
    return %c0_i32, %c0_i32_0 : i32, i32
  }
  func.func @transform_5(%arg0: i32) -> (i32, i32) {
    %c0_i32 = arith.constant 0 : i32
    %c0_i32_0 = arith.constant 0 : i32
    %c0_i32_1 = arith.constant 0 : i32
    return %c0_i32, %c0_i32_0 : i32, i32
  }
  func.func @transform_6(%arg0: i32) -> (i32, i32) {
    %c0_i32 = arith.constant 0 : i32
    %c0_i32_0 = arith.constant 0 : i32
    %c0_i32_1 = arith.constant 0 : i32
    return %c0_i32, %c0_i32_0 : i32, i32
  }
  func.func @transform_7(%arg0: i32) -> (i32, i32, i32) {
    %c0_i32 = arith.constant 0 : i32
    %c0_i32_0 = arith.constant 0 : i32
    %c0_i32_1 = arith.constant 0 : i32
    return %arg0, %c0_i32, %c0_i32_0 : i32, i32, i32
  }
}

</mosaic_0001>

<bundles_post_ra>
// kernel: downsample_forward.1
= control target key start
LH: loop header
LB: loop body
LE: loop exit
PB: predicated region body
PF: predicated region fallthrough
CT: control target
= control target key end

     0   :  { %s2945_s24 = smov 0   ;;  %s3730_s0 = inlined_call_operand.vmem [shape: bf16[2,36,9,4], index: 0, kind: input, shape index: {}]   ;;  %s3731_s1 = inlined_call_operand.vmem [shape: bf16[36,8], index: 1, kind: input, shape index: {}]   ;;  %s3732_s2 = inlined_call_operand.vmem [shape: f32[1,4], index: 2, kind: input, shape index: {}]   ;;  %s3733_s3 = inlined_call_operand.vmem [shape: f32[1,8], index: 3, kind: input, shape index: {}]   ;;  %s3734_s4 = inlined_call_operand.vmem [shape: f32[1,8], index: 4, kind: input, shape index: {}]   ;;  %s3735_s5 = inlined_call_operand.vmem [shape: bf16[8,72], index: 5, kind: input, shape index: {}]   ;;  %s3736_s6 = inlined_call_operand.vmem [shape: f32[8,1], index: 6, kind: input, shape index: {}]   ;;  %s3737_s7 = inlined_call_operand.vmem [shape: f32[2,8,64], index: 7, kind: output, shape index: {}]  }
   0x1 LB: > { %s2579_s25 = sadd.s32 4294967295, %s2888_s24   ;;  %p2583_p0 = scmp.ge.s32.totalorder %s2888_s24, 1  ;;  %s2888_s24 = sphi %s2945_s24, %s17_s24  }
   0x2   : > { %p237_p1 = scmp.lt.s32.totalorder %s2888_s24, 3 }
   0x4   : > { %p238_p2 = pnand %p2583_p0, %p237_p1 }
   0x5   : > { %p268_p3 = scmp.lt.s32.totalorder (!%p238_p2), %s2579_s25, 1  ;;  %v2964_v0 = vld [vmem:[%s3732_s2] ss:$0 sm:$0xff] (!%p238_p2)  ;;  %s2890_s9 = smov (!%p238_p2), 12  }
   0x6   : > { %241 = sbr.rel (%p238_p2) target bundleno = 888 (0x378), region = 48  ;;  %s2891_s10 = smov (!%p238_p2), 4  }
   0x7   : > { %s2892_s11 = smov (!%p238_p2), 16   ;;  %s2893_s12 = smov (!%p238_p2), 24  }
   0x8   : > { %s2894_s13 = smov (!%p238_p2), 28   ;;  %s2895_s14 = smov (!%p238_p2), 8  }
   0x9   : > { %s2896_s19 = smov (!%p238_p2), 20   ;;  %s2897_s20 = smov (!%p238_p2), 32  }
   0xa   : > { %s2900_s30 = smov (!%p238_p2), 40   ;;  %s2901_s8 = smov (!%p238_p2), 64  }
   0xd   : > { %s3749_s25 = smov (!%p268_p3, %s2579_s25), 1 }
   0xe   : > { %s2842_s26 = smul.u32 288, %s3749_s25 }
  0x10   : > { %s2959_s29 = scalar_lea.vmem %s3730_s0, %s2842_s26 }
  0x11   : > { %v318_v1 = vld [vmem:[%s2959_s29 + $0xa0] ss:$8 sps:$4 sm:$0xff]   ;;  %v314_v34 = vld [vmem:[%s2959_s29 + $0x90] ss:$8 sps:$4 sm:$0xff]  }
  0x12   : > { %v296_v2 = vld [vmem:[%s2959_s29 + $0x48] ss:$8 sps:$4 sm:$0xff]   ;;  %v386_v4 = vunpack.c.l.bf16 %v318_v1  ;;  %v388_v5 = vunpack.c.h.bf16 %v318_v1  ;;  %v284_v39 = vld [vmem:[%s2959_s29 + $0x18] ss:$8 sps:$4 sm:$0xff]   ;;  %v382_v46 = vunpack.c.l.bf16 %v314_v34  ;;  %v384_v48 = vunpack.c.h.bf16 %v314_v34 }
  0x13   : > { %v300_v3 = vld [vmem:[%s2959_s29 + $0x58] ss:$144 sps:$4 sm:$0xff]   ;;  %v364_v6 = vunpack.c.l.bf16 %v296_v2  ;;  %v366_v7 = vunpack.c.h.bf16 %v296_v2  ;;  %v336_v8 = vld [vmem:[%s2959_s29 + $0x60] ss:$144 sps:$4 sm:$0xff]   ;;  %v352_v49 = vunpack.c.l.bf16 %v284_v39  ;;  %v354_v50 = vunpack.c.h.bf16 %v284_v39 }
  0x14   : > { %v368_v9 = vunpack.c.l.bf16 %v300_v3  ;;  %v402_v10 = vunpack.c.h.bf16 %v300_v3  ;;  %v404_v11 = vunpack.c.h.bf16 %v336_v8  ;;  %v370_v12 = vunpack.c.l.bf16 %v336_v8  ;;  %v330_v51 = vld [vmem:[%s2959_s29 + $0xd8] ss:$8 sps:$4 sm:$0xff]   ;;  %v304_v60 = vld [vmem:[%s2959_s29 + $0x10] ss:$88 sps:$4 sm:$0xff]  }
  0x15   : > { %vm455_vm0 = vcmp.ge.f32.partialorder %v386_v4, 0.0  ;;  %vm457_vm1 = vcmp.ge.f32.partialorder %v388_v5, 0.0  ;;  %v529_v13 = vmul.f32 %v2964_v0, %v386_v4  ;;  %v531_v14 = vmul.f32 %v2964_v0, %v388_v5 }
  0x16   : > { %vm433_vm2 = vcmp.ge.f32.partialorder %v364_v6, 0.0  ;;  %vm435_vm3 = vcmp.ge.f32.partialorder %v366_v7, 0.0  ;;  %vm437_vm4 = vcmp.ge.f32.partialorder %v368_v9, 0.0  ;;  %v507_v15 = vmul.f32 %v2964_v0, %v364_v6 }
  0x17   : > { %v597_v16 = vsel %vm455_vm0, %v386_v4, %v529_v13  ;;  %v599_v17 = vsel %vm457_vm1, %v388_v5, %v531_v14  ;;  %v509_v18 = vmul.f32 %v2964_v0, %v366_v7  ;;  %v511_v19 = vmul.f32 %v2964_v0, %v368_v9 }
  0x18   : > { %v2762_v20 = vpack.c.bf16 %v599_v17, %v597_v16  ;;  %v2773_v21 = vpack.c.bf16 %v597_v16, %v597_v16  ;;  %v2775_v22 = vpack.c.bf16 %v599_v17, %v599_v17  ;;  %v575_v23 = vsel %vm433_vm2, %v364_v6, %v507_v15 }
  0x19   : > { %v2975_v24 = vsel %vm435_vm3, %v366_v7, %v509_v18  ;;  %v2977_v25 = vsel %vm437_vm4, %v368_v9, %v511_v19  ;;  %vm471_vm5 = vcmp.ge.f32.partialorder %v402_v10, 0.0  ;;  %vm473_vm6 = vcmp.ge.f32.partialorder %v404_v11, 0.0 }
  0x1a   : > { %v1020_v26 = vshrl.u32 %v2773_v21, 16  ;;  %v1023_v27 = vshll.u32 %v2773_v21, 16  ;;  %v1034_v28 = vshrl.u32 %v2775_v22, 16  ;;  %v1037_v29 = vshll.u32 %v2775_v22, 16  ;;  %915 = vrot.lane.b32.xlu1 %v2762_v20, %s2890_s9  ;;  %v280_v20 = vld [vmem:[%s2959_s29] ss:$8 sps:$4 sm:$0xff]  }
  0x1b   : > { %v2741_v30 = vpack.c.bf16 %v2975_v24, %v575_v23  ;;  %v2789_v31 = vpack.c.bf16 %v2977_v25, %v2975_v24  ;;  %v545_v32 = vmul.f32 %v2964_v0, %v402_v10  ;;  %v547_v33 = vmul.f32 %v2964_v0, %v404_v11 }
  0x1c   : > { %v1022_v35 = vrot.slane %v1020_v26, 4  ;;  %v1025_v36 = vrot.slane %v1023_v27, 5  ;;  %v1036_v37 = vrot.slane %v1034_v28, 4  ;;  %v1039_v38 = vrot.slane %v1037_v29, 5 }
  0x1d   : > { %708 = vrot.lane.b32.xlu0 %v2741_v30, %s2891_s10  ;;  %v613_v40 = vsel %vm471_vm5, %v402_v10, %v545_v32  ;;  %v615_v41 = vsel %vm473_vm6, %v404_v11, %v547_v33  ;;  %vm439_vm7 = vcmp.ge.f32.partialorder %v370_v12, 0.0  ;;  %v513_v42 = vmul.f32 %v2964_v0, %v370_v12 }
  0x1e   : > { %v1026_v43 = vor.u32 %v1025_v36, %v1022_v35  ;;  %v1040_v44 = vor.u32 %v1039_v38, %v1036_v37  ;;  %v2766_v45 = vpack.c.bf16 %v615_v41, %v613_v40  ;;  %vm451_vm8 = vcmp.ge.f32.partialorder %v382_v46, 0.0  ;;  %v279_v35 = vld [vmem:[%s2959_s29 + $0x4] sm:$0x1]  ;;  %v281_v36 = vld [vmem:[%s2959_s29 + $0xc] sm:$0x1] }
  0x1f   : > { %v2991_v47 = vsel %vm439_vm7, %v370_v12, %v513_v42  ;;  %vm453_vm9 = vcmp.ge.f32.partialorder %v384_v48, 0.0  ;;  %v525_v55 = vmul.f32 %v2964_v0, %v382_v46  ;;  %v527_v56 = vmul.f32 %v2964_v0, %v384_v48  ;;  %v283_v41 = vld [vmem:[%s2959_s29 + $0x14] sm:$0x1]  ;;  %v285_v42 = vld [vmem:[%s2959_s29 + $0x1c] sm:$0x1] }
  0x20   : > { %v2994_v52 = vrot.slane %v1026_v43, 4  ;;  %v2996_v53 = vrot.slane %v1040_v44, 4  ;;  %952 = vrot.lane.b32.xlu1 %v2766_v45, %s2892_s11  ;;  %v2742_v54 = vpack.c.bf16 %v2991_v47, %v2977_v25  ;;  %vm421_vm10 = vcmp.ge.f32.partialorder %v352_v49, 0.0 }
  0x21   : > { %vm423_vm11 = vcmp.ge.f32.partialorder %v354_v50, 0.0  ;;  %v495_v57 = vmul.f32 %v2964_v0, %v352_v49  ;;  %v497_v58 = vmul.f32 %v2964_v0, %v354_v50  ;;  %v398_v59 = vunpack.c.l.bf16 %v330_v51 }
  0x22   : > { %710 = vrot.lane.b32.xlu0 %v2742_v54, %s2891_s10  ;;  %v593_v61 = vsel %vm451_vm8, %v382_v46, %v525_v55  ;;  %v595_v62 = vsel %vm453_vm9, %v384_v48, %v527_v56  ;;  %v400_v63 = vunpack.c.h.bf16 %v330_v51  ;;  %v372_v1 = vunpack.c.h.bf16 %v304_v60 }
  0x23   : > { %v2761_v2 = vpack.c.bf16 %v595_v62, %v593_v61  ;;  %v2769_v3 = vpack.c.bf16 %v593_v61, %v593_v61  ;;  %v2771_v4 = vpack.c.bf16 %v595_v62, %v595_v62  ;;  %v3007_v5 = vsel %vm421_vm10, %v352_v49, %v495_v57 }
  0x24   : > { %v3009_v6 = vsel %vm423_vm11, %v354_v50, %v497_v58  ;;  %v2751_v7 = vpack.c.bf16 %v3007_v5, %v3007_v5  ;;  %vm467_vm12 = vcmp.ge.f32.partialorder %v398_v59, 0.0  ;;  %vm469_vm13 = vcmp.ge.f32.partialorder %v400_v63, 0.0 }
  0x25   : > { %v992_v8 = vshrl.u32 %v2769_v3, 16  ;;  %v995_v9 = vshll.u32 %v2769_v3, 16  ;;  %v1006_v10 = vshrl.u32 %v2771_v4, 16  ;;  %v1009_v11 = vshll.u32 %v2771_v4, 16 }
  0x26   : > { %913 = vrot.lane.b32.xlu0 %v2761_v2, %s2890_s9  ;;  %v2753_v12 = vpack.c.bf16 %v3009_v6, %v3009_v6  ;;  %v2786_v13 = vpack.c.bf16 %v3009_v6, %v3007_v5  ;;  %v795_v14 = vshrl.u32 %v2751_v7, 16  ;;  %v798_v15 = vshll.u32 %v2751_v7, 16 }
  0x27   : > { %v3018_v16 = vrot.slane %v992_v8, 4  ;;  %v3020_v17 = vrot.slane %v995_v9, 5  ;;  %v3022_v18 = vrot.slane %v1006_v10, 4  ;;  %v3024_v19 = vrot.slane %v1009_v11, 5 }
  0x28   : > { %v809_v21 = vshrl.u32 %v2753_v12, 16  ;;  %v812_v22 = vshll.u32 %v2753_v12, 16  ;;  %1140 = vrot.lane.b32.xlu1 %v2786_v13, %s2893_s12  ;;  %v3028_v23 = vrot.slane %v795_v14, 4  ;;  %v3030_v26 = vrot.slane %v798_v15, 5 }
  0x29   : > { %v541_v27 = vmul.f32 %v2964_v0, %v398_v59  ;;  %v543_v28 = vmul.f32 %v2964_v0, %v400_v63  ;;  %vm441_vm14 = vcmp.ge.f32.partialorder %v372_v1, 0.0  ;;  %v515_v29 = vmul.f32 %v2964_v0, %v372_v1 }
  0x2a   : > { %v3035_v30 = vrot.slane %v809_v21, 4  ;;  %v3037_v32 = vrot.slane %v812_v22, 5  ;;  %v348_v33 = vunpack.c.h.bf16 %v280_v20  ;;  %v350_v34 = vunpack.c.l.bf16 %v304_v60 }
  0x2b   : > { %v609_v37 = vsel %vm467_vm12, %v398_v59, %v541_v27  ;;  %v611_v38 = vsel %vm469_vm13, %v400_v63, %v543_v28  ;;  %v3043_v39 = vsel %vm441_vm14, %v372_v1, %v515_v29  ;;  %v346_v40 = vunpack.c.l.bf16 %v280_v20  ;;  %v315_v29 = vld [vmem:[%s2959_s29 + $0x94] sm:$0x1] }
  0x2c   : > { %v2765_v43 = vpack.c.bf16 %v611_v38, %v609_v37  ;;  %v2790_v44 = vpack.c.bf16 %v3043_v39, %v2991_v47  ;;  %vm417_vm15 = vcmp.ge.f32.partialorder %v348_v33, 0.0  ;;  %vm419_vm0 = vcmp.ge.f32.partialorder %v350_v34, 0.0  ;;  %v317_v37 = vld [vmem:[%s2959_s29 + $0x9c] sm:$0x1]  ;;  %v2462_v38 = vld [vmem:[%s3736_s6] sm:$0xff] }
  0x2d   : > { %v491_v45 = vmul.f32 %v2964_v0, %v348_v33  ;;  %v493_v46 = vmul.f32 %v2964_v0, %v350_v34  ;;  %v347_v48 = vunpack.c.l.bf16 %v279_v35  ;;  %v349_v49 = vunpack.c.l.bf16 %v281_v36 }
  0x2e   : > { %vm749_vm1 = vsmask.f32 3328  ;;  %vm750_vm2 = vsmask.f32 7440  ;;  %950 = vrot.lane.b32.xlu0 %v2765_v43, %s2892_s11  ;;  %1163 = vrot.lane.b32.xlu1 %v2790_v44, %s2894_s13  ;;  %vm415_vm3 = vcmp.ge.f32.partialorder %v346_v40, 0.0  ;;  %v489_v50 = vmul.f32 %v2964_v0, %v346_v40 }
  0x2f   : > { %v351_v51 = vunpack.c.l.bf16 %v283_v41  ;;  %v353_v47 = vunpack.c.l.bf16 %v285_v42  ;;  %v3054_v54 = vsel %vm417_vm15, %v348_v33, %v491_v45  ;;  %v3056_v55 = vsel %vm419_vm0, %v350_v34, %v493_v46  ;;  %vm3082_vm8 = vmor %vm749_vm1, %vm750_vm2 }
  0x30   : > { %vm416_vm4 = vcmp.ge.f32.partialorder %v347_v48, 0.0  ;;  %vm418_vm5 = vcmp.ge.f32.partialorder %v349_v49, 0.0  ;;  %v2749_v56 = vpack.c.bf16 %v3056_v55, %v3056_v55  ;;  %v2785_v57 = vpack.c.bf16 %v3056_v55, %v3054_v54 }
  0x31   : > { %v2747_v58 = vpack.c.bf16 %v3054_v54, %v3054_v54  ;;  %v490_v59 = vmul.f32 %v2964_v0, %v347_v48  ;;  %v492_v60 = vmul.f32 %v2964_v0, %v349_v49  ;;  %v3066_v61 = vsel %vm415_vm3, %v346_v40, %v489_v50 }
  0x32   : > { %vm420_vm6 = vcmp.ge.f32.partialorder %v351_v51, 0.0  ;;  %vm422_vm7 = vcmp.ge.f32.partialorder %v353_v47, 0.0  ;;  %v781_v62 = vshrl.u32 %v2749_v56, 16  ;;  %v784_v63 = vshll.u32 %v2749_v56, 16  ;;  %1138 = vrot.lane.b32.xlu0 %v2785_v57, %s2893_s12 }
  0x33   : > { %v767_v1 = vshrl.u32 %v2747_v58, 16  ;;  %v770_v2 = vshll.u32 %v2747_v58, 16  ;;  %v558_v3 = vsel %vm416_vm4, %v347_v48, %v490_v59  ;;  %v560_v4 = vsel %vm418_vm5, %v349_v49, %v492_v60  ;;  %v319_v59 = vld [vmem:[%s2959_s29 + $0xa4] sm:$0x1] }
  0x34   : > { %v2745_v7 = vpack.c.bf16 %v3066_v61, %v3066_v61  ;;  %v494_v8 = vmul.f32 %v2964_v0, %v351_v51  ;;  %v783_v9 = vrot.slane %v781_v62, 4  ;;  %v786_v10 = vrot.slane %v784_v63, 5 }
  0x35   : > { %v769_v11 = vrot.slane %v767_v1, 4  ;;  %v772_v12 = vrot.slane %v770_v2, 5  ;;  %v2746_v13 = vpack.c.bf16 %v558_v3, %v558_v3  ;;  %v2748_v14 = vpack.c.bf16 %v560_v4, %v560_v4  ;;  %v321_v2 = vld [vmem:[%s2959_s29 + $0xac] sm:$0x1] }
  0x36   : > { %v753_v15 = vshrl.u32 %v2745_v7, 16  ;;  %v756_v20 = vshll.u32 %v2745_v7, 16  ;;  %1161 = vrot.lane.b32.xlu0 %v2789_v31, %s2894_s13  ;;  %v496_v22 = vmul.f32 %v2964_v0, %v353_v47  ;;  %v562_v27 = vsel %vm420_vm6, %v351_v51, %v494_v8 }
  0x37   : > { %v773_v21 = vor.u32 %v772_v12, %v769_v11  ;;  %v787_v28 = vor.u32 %v786_v10, %v783_v9  ;;  %v762_v35 = vshll.u32 %v2746_v13, 16  ;;  %v776_v36 = vshll.u32 %v2748_v14, 16  ;;  %v287_v9 = vld [vmem:[%s2959_s29 + $0x24] sm:$0x1]  ;;  %v306_v14 = vld [vmem:[%s2959_s29 + $0x70] ss:$8 sps:$4 sm:$0xff]  }
  0x38   : > { %v755_v33 = vrot.slane %v753_v15, 4  ;;  %v758_v34 = vrot.slane %v756_v20, 5  ;;  %v564_v24 = vsel %vm422_vm7, %v353_v47, %v496_v22  ;;  %v2750_v25 = vpack.c.bf16 %v562_v27, %v562_v27 }
  0x39   : > { %v774_v40 = vrot.slane %v773_v21, 4  ;;  %v788_v31 = vrot.slane %v787_v28, 4  ;;  %v764_v42 = vrot.slane %v762_v35, 5  ;;  %v778_v43 = vrot.slane %v776_v36, 5 }
  0x3a   : > { %v759_v41 = vor.u32 %v758_v34, %v755_v33  ;;  %v2752_v44 = vpack.c.bf16 %v564_v24, %v564_v24  ;;  %v790_v45 = vshll.u32 %v2750_v25, 16  ;;  %v801_v46 = vor.u32 %v3030_v26, %v3028_v23  ;;  %v2867_v34 = vld [vmem:[%s3731_s1] sm:$0xff]  }
  0x3b   : > { %v383_v48 = vunpack.c.l.bf16 %v315_v29  ;;  %v385_v49 = vunpack.c.l.bf16 %v317_v37  ;;  %v3091_v51 = vsel %vm3082_vm8, %v774_v40, %v778_v43  ;;  %v998_v56 = vor.u32 %v3020_v17, %v3018_v16  ;;  %2815 = vmatprep.subr.bf16.mxu0 %v2867_v34  ;;  %v2868_v43 = vld [vmem:[%s3731_s1 + $0x8] sm:$0xff]  }
  0x3c   : > { %v760_v50 = vrot.slane %v759_v41, 4  ;;  %v804_v47 = vshll.u32 %v2752_v44, 16  ;;  %v792_v57 = vrot.slane %v790_v45, 5  ;;  %v802_v58 = vrot.slane %v801_v46, 4  ;;  %2816 = vmatpush3.bf16.msra.mxu0 %v2867_v34 }
  0x3d   : > { %vm452_vm9 = vcmp.ge.f32.partialorder %v383_v48, 0.0  ;;  %vm454_vm10 = vcmp.ge.f32.partialorder %v385_v49, 0.0  ;;  %v526_v60 = vmul.f32 %v2964_v0, %v383_v48  ;;  %v528_v62 = vmul.f32 %v2964_v0, %v385_v49  ;;  %2817 = vmatprep.subr.bf16.mxu0 %v2868_v43 }
  0x3e   : > { %v765_v23 = vsel %vm3082_vm8, %v760_v50, %v764_v42  ;;  %v806_v26 = vrot.slane %v804_v47, 5  ;;  %v3103_v16 = vsel %vm3082_vm8, %v788_v31, %v792_v57  ;;  %v999_v17 = vrot.slane %v998_v56, 4  ;;  %v310_v42 = vld [vmem:[%s2959_s29 + $0x28] ss:$88 sps:$4 sm:$0xff]   ;;  %v289_v56 = vld [vmem:[%s2959_s29 + $0x2c] sm:$0x1] }
  0x3f   : > { %v2611_v63 = vcombine.low %v765_v23, %v3091_v51  ;;  %v1012_v1 = vor.u32 %v3024_v19, %v3022_v18  ;;  %v594_v4 = vsel %vm452_vm9, %v383_v48, %v526_v60  ;;  %v596_v7 = vsel %vm454_vm10, %v385_v49, %v528_v62 }
  0x40   : > { %v3110_v3 = vsel %vm3082_vm8, %v802_v58, %v806_v26  ;;  %v387_v8 = vunpack.c.l.bf16 %v319_v59  ;;  %v2770_v11 = vpack.c.bf16 %v594_v4, %v594_v4  ;;  %v2772_v12 = vpack.c.bf16 %v596_v7, %v596_v7  ;;  %2818 = vmatpush3.bf16.msra.mxu0 %v2868_v43  ;;  %v291_v7 = vld [vmem:[%s2959_s29 + $0x34] sm:$0x1] }
  0x41   : > { %876 = vrot.lane.b32.xlu1 %v2611_v63, %s2895_s14  ;;  %v2612_v10 = vcombine.low %v3103_v16, %v3110_v3  ;;  %v1013_v13 = vrot.slane %v1012_v1, 4  ;;  %v389_v18 = vunpack.c.l.bf16 %v321_v2  ;;  %v2653_v15 = vcombine.low %v3091_v51, %v3103_v16  ;;  %v290_v1 = vld [vmem:[%s2959_s29 + $0x30] ss:$8 sps:$4 sm:$0xff]  }
  0x42   : > { %vm456_vm11 = vcmp.ge.f32.partialorder %v387_v8, 0.0  ;;  %v530_v19 = vmul.f32 %v2964_v0, %v387_v8  ;;  %v1001_v20 = vshll.u32 %v2770_v11, 16  ;;  %v1015_v21 = vshll.u32 %v2772_v12, 16 }
  0x43   : > { %v355_v22 = vunpack.c.l.bf16 %v287_v9  ;;  %v815_v27 = vor.u32 %v3037_v32, %v3035_v30  ;;  %vm458_vm12 = vcmp.ge.f32.partialorder %v389_v18, 0.0  ;;  %v532_v28 = vmul.f32 %v2964_v0, %v389_v18 }
  0x44   : > { %v598_v29 = vsel %vm456_vm11, %v387_v8, %v530_v19  ;;  %v374_v33 = vunpack.c.l.bf16 %v306_v14  ;;  %v1003_v35 = vrot.slane %v1001_v20, 5  ;;  %v1017_v36 = vrot.slane %v1015_v21, 5 }
  0x45   : > { %878 = vrot.lane.b32.xlu1 %v2612_v10, %s2895_s14  ;;  %v2774_v37 = vpack.c.bf16 %v598_v29, %v598_v29  ;;  %vm424_vm13 = vcmp.ge.f32.partialorder %v355_v22, 0.0  ;;  %v600_v40 = vsel %vm458_vm12, %v389_v18, %v532_v28  ;;  %v498_v24 = vmul.f32 %v2964_v0, %v355_v22  ;;  %v293_v10 = vld [vmem:[%s2959_s29 + $0x3c] sm:$0x1] }
  0x46   : > { %v816_v30 = vrot.slane %v815_v27, 4  ;;  %vm443_vm14 = vcmp.ge.f32.partialorder %v374_v33, 0.0  ;;  %v1004_v32 = vsel %vm3082_vm8, %v999_v17, %v1003_v35  ;;  %v1018_v25 = vsel %vm3082_vm8, %v1013_v13, %v1017_v36 }
  0x47   : > { %v2776_v31 = vpack.c.bf16 %v600_v40, %v600_v40  ;;  %v1029_v41 = vshll.u32 %v2774_v37, 16  ;;  %v2639_v44 = vcombine.low %v1004_v32, %v1018_v25  ;;  %v566_v45 = vsel %vm424_vm13, %v355_v22, %v498_v24 }
  0x48   : > { %v517_v46 = vmul.f32 %v2964_v0, %v374_v33  ;;  %v376_v48 = vunpack.c.h.bf16 %v306_v14  ;;  %v2754_v51 = vpack.c.bf16 %v566_v45, %v566_v45  ;;  %v378_v47 = vunpack.c.h.bf16 %v310_v42 }
  0x49   : > { %v1031_v49 = vrot.slane %v1029_v41, 5  ;;  %v1043_v50 = vshll.u32 %v2776_v31, 16  ;;  %1115 = vrot.lane.b32.xlu0 %v2639_v44, %s2896_s19  ;;  %v356_v59 = vunpack.c.l.bf16 %v310_v42  ;;  %v357_v17 = vunpack.c.l.bf16 %v289_v56 }
  0x4a   : > { %v3140_v57 = vsel %vm443_vm14, %v374_v33, %v517_v46  ;;  %vm445_vm15 = vcmp.ge.f32.partialorder %v376_v48, 0.0  ;;  %v519_v58 = vmul.f32 %v2964_v0, %v376_v48  ;;  %v818_v60 = vshll.u32 %v2754_v51, 16  ;;  %v322_v33 = vld [vmem:[%s2959_s29 + $0xb0] ss:$8 sps:$4 sm:$0xff]  }
  0x4b   : > { %v1032_v23 = vsel %vm3082_vm8, %v2994_v52, %v1031_v49  ;;  %v1045_v26 = vrot.slane %v1043_v50, 5  ;;  %v2743_v62 = vpack.c.bf16 %v3140_v57, %v3043_v39  ;;  %vm447_vm0 = vcmp.ge.f32.partialorder %v378_v47, 0.0 }
  0x4c   : > { %v521_v63 = vmul.f32 %v2964_v0, %v378_v47  ;;  %v3149_v16 = vsel %vm445_vm15, %v376_v48, %v519_v58  ;;  %v820_v4 = vrot.slane %v818_v60, 5  ;;  %vm425_vm1 = vcmp.ge.f32.partialorder %v356_v59, 0.0 }
  0x4d   : > { %v1046_v2 = vsel %vm3082_vm8, %v2996_v53, %v1045_v26  ;;  %v499_v52 = vmul.f32 %v2964_v0, %v356_v59  ;;  %1200 = vrot.lane.b32.xlu0 %v2653_v15, %s2897_s20  ;;  %vm426_vm2 = vcmp.ge.f32.partialorder %v357_v17, 0.0  ;;  %v500_v9 = vmul.f32 %v2964_v0, %v357_v17 }
  0x4e   : > { %v2640_v8 = vcombine.low %v1032_v23, %v1046_v2  ;;  %v3158_v39 = vsel %vm447_vm0, %v378_v47, %v521_v63  ;;  %v3164_v11 = vsel %vm3082_vm8, %v816_v30, %v820_v4  ;;  %v358_v13 = vunpack.c.l.bf16 %v290_v1  ;;  %v326_v23 = vld [vmem:[%s2959_s29 + $0xc0] ss:$8 sps:$4 sm:$0xff]  }
  0x4f   : > { %v2744_v53 = vpack.c.bf16 %v3158_v39, %v3149_v16  ;;  %v3168_v12 = vsel %vm425_vm1, %v356_v59, %v499_v52  ;;  %v2654_v14 = vcombine.low %v3110_v3, %v3164_v11  ;;  %v568_v18 = vsel %vm426_vm2, %v357_v17, %v500_v9  ;;  %v338_v63 = vld [vmem:[%s2959_s29 + $0xf8] ss:$8 sps:$4 sm:$0xff]  }
  0x50   : > { %1117 = vrot.lane.b32.xlu1 %v2640_v8, %s2896_s19  ;;  %v2755_v19 = vpack.c.bf16 %v3168_v12, %v3168_v12  ;;  %v359_v15 = vunpack.c.l.bf16 %v291_v7  ;;  %v2756_v20 = vpack.c.bf16 %v568_v18, %v568_v18  ;;  %v360_v21 = vunpack.c.h.bf16 %v290_v1 }
  0x51   : > { %v361_v22 = vunpack.c.l.bf16 %v293_v10  ;;  %vm427_vm3 = vcmp.ge.f32.partialorder %v358_v13, 0.0  ;;  %712 = vrot.lane.b32.xlu0 %v2743_v62, %s2891_s10  ;;  %v501_v29 = vmul.f32 %v2964_v0, %v358_v13  ;;  %v390_v25 = vunpack.c.l.bf16 %v322_v33 }
  0x52   : > { %v823_v27 = vshrl.u32 %v2755_v19, 16  ;;  %v826_v28 = vshll.u32 %v2755_v19, 16  ;;  %vm428_vm4 = vcmp.ge.f32.partialorder %v359_v15, 0.0  ;;  %v832_v34 = vshll.u32 %v2756_v20, 16 }
  0x53   : > { %vm429_vm5 = vcmp.ge.f32.partialorder %v360_v21, 0.0  ;;  %vm430_vm6 = vcmp.ge.f32.partialorder %v361_v22, 0.0  ;;  %v502_v3 = vmul.f32 %v2964_v0, %v359_v15  ;;  %v503_v37 = vmul.f32 %v2964_v0, %v360_v21 }
  0x54   : > { %1202 = vrot.lane.b32.xlu1 %v2654_v14, %s2897_s20  ;;  %v825_v35 = vrot.slane %v823_v27, 4  ;;  %v828_v36 = vrot.slane %v826_v28, 5  ;;  %v504_v40 = vmul.f32 %v2964_v0, %v361_v22  ;;  %v834_v24 = vrot.slane %v832_v34, 5 }
  0x55   : > { %v3183_v30 = vsel %vm427_vm3, %v358_v13, %v501_v29  ;;  %v570_v32 = vsel %vm428_vm4, %v359_v15, %v502_v3  ;;  %v3185_v41 = vsel %vm429_vm5, %v360_v21, %v503_v37  ;;  %v392_v48 = vunpack.c.h.bf16 %v322_v33 }
  0x56   : > { %v829_v31 = vor.u32 %v828_v36, %v825_v35  ;;  %v572_v42 = vsel %vm430_vm6, %v361_v22, %v504_v40  ;;  %v2757_v43 = vpack.c.bf16 %v3183_v30, %v3183_v30  ;;  %v2758_v44 = vpack.c.bf16 %v570_v32, %v570_v32 }
  0x57   : > { %v2759_v45 = vpack.c.bf16 %v3185_v41, %v3185_v41  ;;  %v2760_v46 = vpack.c.bf16 %v572_v42, %v572_v42  ;;  %vm459_vm7 = vcmp.ge.f32.partialorder %v390_v25, 0.0  ;;  %vm461_vm9 = vcmp.ge.f32.partialorder %v392_v48, 0.0  ;;  %v342_v42 = vld [vmem:[%s2959_s29 + $0x108] ss:$8 sps:$4 sm:$0xff]  }
  0x58   : > { %714 = vrot.lane.b32.xlu1 %v2744_v53, %s2891_s10  ;;  %v830_v49 = vrot.slane %v829_v31, 4  ;;  %v837_v50 = vshrl.u32 %v2757_v43, 16  ;;  %v840_v51 = vshll.u32 %v2757_v43, 16  ;;  %v846_v47 = vshll.u32 %v2758_v44, 16 }
  0x59   : > { %v851_v56 = vshrl.u32 %v2759_v45, 16  ;;  %v854_v58 = vshll.u32 %v2759_v45, 16  ;;  %v860_v59 = vshll.u32 %v2760_v46, 16  ;;  %v533_v8 = vmul.f32 %v2964_v0, %v390_v25 }
  0x5a   : > { %v3195_v26 = vsel %vm3082_vm8, %v830_v49, %v834_v24  ;;  %v839_v60 = vrot.slane %v837_v50, 4  ;;  %v842_v62 = vrot.slane %v840_v51, 5  ;;  %v848_v1 = vrot.slane %v846_v47, 5 }
  0x5b   : > { %v2613_v17 = vcombine.low %v3164_v11, %v3195_v26  ;;  %v853_v2 = vrot.slane %v851_v56, 4  ;;  %v856_v4 = vrot.slane %v854_v58, 5  ;;  %v862_v7 = vrot.slane %v860_v59, 5  ;;  %v323_v58 = vld [vmem:[%s2959_s29 + $0xb4] sm:$0x1] }
  0x5c   : > { %v843_v52 = vor.u32 %v842_v62, %v839_v60  ;;  %v535_v9 = vmul.f32 %v2964_v0, %v392_v48  ;;  %v394_v53 = vunpack.c.l.bf16 %v326_v23  ;;  %v396_v13 = vunpack.c.h.bf16 %v326_v23 }
  0x5d   : > { %880 = vrot.lane.b32.xlu0 %v2613_v17, %s2895_s14  ;;  %v857_v10 = vor.u32 %v856_v4, %v853_v2  ;;  %v406_v14 = vunpack.c.l.bf16 %v338_v63  ;;  %v601_v19 = vsel %vm459_vm7, %v390_v25, %v533_v8  ;;  %v408_v15 = vunpack.c.h.bf16 %v338_v63  ;;  %v325_v63 = vld [vmem:[%s2959_s29 + $0xbc] sm:$0x1]  ;;  %v327_v4 = vld [vmem:[%s2959_s29 + $0xc4] sm:$0x1] }
  0x5e   : > { %v844_v18 = vrot.slane %v843_v52, 4  ;;  %v603_v11 = vsel %vm461_vm9, %v392_v48, %v535_v9  ;;  %v2777_v22 = vpack.c.bf16 %v601_v19, %v601_v19  ;;  %vm463_vm10 = vcmp.ge.f32.partialorder %v394_v53, 0.0  ;;  %v329_v52 = vld [vmem:[%s2959_s29 + $0xcc] sm:$0x1] }
  0x5f   : > { %v858_v20 = vrot.slane %v857_v10, 4  ;;  %v2763_v21 = vpack.c.bf16 %v603_v11, %v601_v19  ;;  %v2779_v27 = vpack.c.bf16 %v603_v11, %v603_v11  ;;  %vm465_vm11 = vcmp.ge.f32.partialorder %v396_v13, 0.0 }
  0x60   : > { %v3207_v28 = vsel %vm3082_vm8, %v844_v18, %v848_v1  ;;  %v537_v29 = vmul.f32 %v2964_v0, %v394_v53  ;;  %v1048_v34 = vshrl.u32 %v2777_v22, 16  ;;  %v1051_v3 = vshll.u32 %v2777_v22, 16 }
  0x61   : > { %v3212_v33 = vsel %vm3082_vm8, %v858_v20, %v862_v7  ;;  %v1062_v35 = vshrl.u32 %v2779_v27, 16  ;;  %917 = vrot.lane.b32.xlu0 %v2763_v21, %s2890_s9  ;;  %v539_v37 = vmul.f32 %v2964_v0, %v396_v13  ;;  %v1065_v25 = vshll.u32 %v2779_v27, 16 }
  0x62   : > { %v2614_v36 = vcombine.low %v3207_v28, %v3212_v33  ;;  %v605_v40 = vsel %vm463_vm10, %v394_v53, %v537_v29  ;;  %v1050_v24 = vrot.slane %v1048_v34, 4  ;;  %v1053_v32 = vrot.slane %v1051_v3, 5 }
  0x63   : > { %v2781_v31 = vpack.c.bf16 %v605_v40, %v605_v40  ;;  %v1064_v43 = vrot.slane %v1062_v35, 4  ;;  %v607_v44 = vsel %vm465_vm11, %v396_v13, %v539_v37  ;;  %vm475_vm12 = vcmp.ge.f32.partialorder %v406_v14, 0.0 }
  0x64   : > { %882 = vrot.lane.b32.xlu1 %v2614_v36, %s2895_s14  ;;  %vm477_vm13 = vcmp.ge.f32.partialorder %v408_v15, 0.0  ;;  %v2764_v45 = vpack.c.bf16 %v607_v44, %v605_v40  ;;  %v2783_v46 = vpack.c.bf16 %v607_v44, %v607_v44  ;;  %v549_v50 = vmul.f32 %v2964_v0, %v406_v14 }
  0x65   : > { %v1076_v48 = vshrl.u32 %v2781_v31, 16  ;;  %v1079_v49 = vshll.u32 %v2781_v31, 16  ;;  %v551_v51 = vmul.f32 %v2964_v0, %v408_v15  ;;  %v410_v47 = vunpack.c.l.bf16 %v342_v42 }
  0x66   : > { %v412_v56 = vunpack.c.h.bf16 %v342_v42  ;;  %v1067_v59 = vrot.slane %v1065_v25, 5  ;;  %v1090_v60 = vshrl.u32 %v2783_v46, 16  ;;  %v1093_v62 = vshll.u32 %v2783_v46, 16 }
  0x67   : > { %v1078_v23 = vrot.slane %v1076_v48, 4  ;;  %v1081_v17 = vrot.slane %v1079_v49, 5  ;;  %v617_v1 = vsel %vm475_vm12, %v406_v14, %v549_v50  ;;  %v619_v2 = vsel %vm477_vm13, %v408_v15, %v551_v51 }
  0x68   : > { %919 = vrot.lane.b32.xlu1 %v2764_v45, %s2890_s9  ;;  %vm479_vm14 = vcmp.ge.f32.partialorder %v410_v47, 0.0  ;;  %v1092_v7 = vrot.slane %v1090_v60, 4  ;;  %v2767_v8 = vpack.c.bf16 %v619_v2, %v617_v1  ;;  %vm481_vm15 = vcmp.ge.f32.partialorder %v412_v56, 0.0  ;;  %v295_v1 = vld [vmem:[%s2959_s29 + $0x44] sm:$0x1]  ;;  %s2902_s9 = smov 56  }
  0x69   : > { %v553_v9 = vmul.f32 %v2964_v0, %v410_v47  ;;  %v1095_v10 = vrot.slane %v1093_v62, 5  ;;  %v555_v53 = vmul.f32 %v2964_v0, %v412_v56  ;;  %v391_v13 = vunpack.c.l.bf16 %v323_v58 }
  0x6a   : > { %v393_v18 = vunpack.c.l.bf16 %v325_v63  ;;  %954 = vrot.lane.b32.xlu0 %v2767_v8, %s2892_s11  ;;  %v1054_v11 = vor.u32 %v1053_v32, %v1050_v24  ;;  %v395_v14 = vunpack.c.l.bf16 %v327_v4  ;;  %v397_v20 = vunpack.c.l.bf16 %v329_v52  ;;  %v294_v24 = vld [vmem:[%s2959_s29 + $0x40] ss:$72 sps:$4 sm:$0xff]   ;;  %s2899_s29 = smov 48  }
  0x6b   : > { %v621_v19 = vsel %vm479_vm14, %v410_v47, %v553_v9  ;;  %v623_v15 = vsel %vm481_vm15, %v412_v56, %v555_v53  ;;  %vm460_vm0 = vcmp.ge.f32.partialorder %v391_v13, 0.0  ;;  %v534_v21 = vmul.f32 %v2964_v0, %v391_v13 }
  0x6c   : > { %vm462_vm1 = vcmp.ge.f32.partialorder %v393_v18, 0.0  ;;  %v2768_v22 = vpack.c.bf16 %v623_v15, %v621_v19  ;;  %v536_v27 = vmul.f32 %v2964_v0, %v393_v18  ;;  %v1068_v29 = vor.u32 %v1067_v59, %v1064_v43 }
  0x6d   : > { %v602_v34 = vsel %vm460_vm0, %v391_v13, %v534_v21  ;;  %vm464_vm2 = vcmp.ge.f32.partialorder %v395_v14, 0.0  ;;  %vm466_vm3 = vcmp.ge.f32.partialorder %v397_v20, 0.0  ;;  %v538_v3 = vmul.f32 %v2964_v0, %v395_v14 }
  0x6e   : > { %956 = vrot.lane.b32.xlu1 %v2768_v22, %s2892_s11  ;;  %v604_v35 = vsel %vm462_vm1, %v393_v18, %v536_v27  ;;  %v2778_v36 = vpack.c.bf16 %v602_v34, %v602_v34  ;;  %v540_v37 = vmul.f32 %v2964_v0, %v397_v20  ;;  %v1082_v40 = vor.u32 %v1081_v17, %v1078_v23 }
  0x6f   : > { %v2780_v32 = vpack.c.bf16 %v604_v35, %v604_v35  ;;  %v1055_v25 = vrot.slane %v1054_v11, 4  ;;  %v606_v31 = vsel %vm464_vm2, %v395_v14, %v538_v3  ;;  %v1096_v42 = vor.u32 %v1095_v10, %v1092_v7 }
  0x70   : > { %v1057_v44 = vshll.u32 %v2778_v36, 16  ;;  %v1069_v45 = vrot.slane %v1068_v29, 4  ;;  %v608_v43 = vsel %vm466_vm3, %v397_v20, %v540_v37  ;;  %v2782_v46 = vpack.c.bf16 %v606_v31, %v606_v31 }
  0x71   : > { %v1071_v48 = vshll.u32 %v2780_v32, 16  ;;  %v2784_v49 = vpack.c.bf16 %v608_v43, %v608_v43  ;;  %v1083_v50 = vrot.slane %v1082_v40, 4  ;;  %v362_v51 = vunpack.c.l.bf16 %v294_v24 }
  0x72   : > { %v1059_v47 = vrot.slane %v1057_v44, 5  ;;  %v1085_v56 = vshll.u32 %v2782_v46, 16  ;;  %v1097_v58 = vrot.slane %v1096_v42, 4  ;;  %v380_v59 = vunpack.c.h.bf16 %v294_v24 }
  0x73   : > { %v1073_v60 = vrot.slane %v1071_v48, 5  ;;  %v1099_v23 = vshll.u32 %v2784_v49, 16  ;;  %vm431_vm4 = vcmp.ge.f32.partialorder %v362_v51, 0.0  ;;  %v505_v62 = vmul.f32 %v2964_v0, %v362_v51 }
  0x74   : > { %v1060_v63 = vsel %vm3082_vm8, %v1055_v25, %v1059_v47  ;;  %v1087_v17 = vrot.slane %v1085_v56, 5  ;;  %vm683_vm5 = vcmask 31744   ;;  %v2787_v9 = vpack.c.bf16 %v3183_v30, %v3168_v12 }
  0x75   : > { %v1074_v2 = vsel %vm3082_vm8, %v1069_v45, %v1073_v60  ;;  %v1101_v4 = vrot.slane %v1099_v23, 5  ;;  %v573_v52 = vsel %vm431_vm4, %v362_v51, %v505_v62  ;;  %v523_v13 = vmul.f32 %v2964_v0, %v380_v59 }
  0x76   : > { %v2641_v7 = vcombine.low %v1060_v63, %v1074_v2  ;;  %v1088_v8 = vsel %vm3082_vm8, %v1083_v50, %v1087_v17  ;;  %v2793_v10 = vpack.c.bf16 %v573_v52, %v573_v52  ;;  %v363_v18 = vunpack.c.l.bf16 %v295_v1 }
  0x77   : > { %v1102_v53 = vsel %vm3082_vm8, %v1097_v58, %v1101_v4  ;;  %v2737_v19 = vpack.c.bf16 %v3054_v54, %v3066_v61  ;;  %vm449_vm6 = vcmp.ge.f32.partialorder %v380_v59, 0.0  ;;  %v2738_v21 = vpack.c.bf16 %v3007_v5, %v3056_v55  ;;  %v2869_v61 = vld [vmem:[%s3731_s1 + $0x10] ss:$0 sps:$4 sm:$0x33]  }
  0x78   : > { %1119 = vrot.lane.b32.xlu0 %v2641_v7, %s2896_s19  ;;  %v2642_v11 = vcombine.low %v1088_v8, %v1102_v53  ;;  %v1182_v14 = vshrl.u32 %v2793_v10, 16  ;;  %v1185_v20 = vshll.u32 %v2793_v10, 16  ;;  %vm432_vm7 = vcmp.ge.f32.partialorder %v363_v18, 0.0 }
  0x79   : > { %v506_v15 = vmul.f32 %v2964_v0, %v363_v18  ;;  %684 = vst.msk [vmem:[#allocation2] sm:$0xff] %vm683_vm5, %v2737_v19  ;;  %v2788_v22 = vpack.c.bf16 %v573_v52, %v3185_v41  ;;  %v591_v29 = vsel %vm449_vm6, %v380_v59, %v523_v13  ;;  %685 = vst.msk [vmem:[#allocation2 + $0x8] sm:$0xff] %vm683_vm5, %v2738_v21  ;;  %vm1261_vm9 = vcmask 1041408   ;;  %v1382_v19 = vld [vmem:[#allocation4 + $0x18] sm:$0x1] }
  0x7a   : > { %1121 = vrot.lane.b32.xlu1 %v2642_v11, %s2896_s19  ;;  %v1184_v27 = vrot.slane %v1182_v14, 4  ;;  %v1187_v54 = vrot.slane %v1185_v20, 5  ;;  %v2791_v0 = vpack.c.bf16 %v3149_v16, %v3140_v57  ;;  %v2739_v3 = vpack.c.bf16 %v3168_v12, %v3009_v6  ;;  %2841 = vmatprep.subr.msk.bf16.mxu0 %vm1261_vm9, %v2869_v61  ;;  %v1408_v11 = vld [vmem:[#allocation4 + $0x1c] sm:$0x1] }
  0x7b   : > { %v574_v34 = vsel %vm432_vm7, %v363_v18, %v506_v15  ;;  %v2740_v35 = vpack.c.bf16 %v3185_v41, %v3183_v30  ;;  %v2792_v36 = vpack.c.bf16 %v591_v29, %v3158_v39  ;;  %v1263_v24 = vsel %vm1261_vm9, %v2869_v61, 0  ;;  %v1385_v29 = vld [vmem:[#allocation4 + $0x20] sm:$0x1] }
  0x7c   : > { %1142 = vrot.lane.b32.xlu0 %v2787_v9, %s2893_s12  ;;  %v2794_v5 = vpack.c.bf16 %v574_v34, %v574_v34  ;;  %v1188_v55 = vor.u32 %v1187_v54, %v1184_v27  ;;  %686 = vst.msk [vmem:[#allocation2 + $0x10] sm:$0xff] %vm683_vm5, %v2739_v3  ;;  %2820 = vmatpush3.bf16.msra.mxu0 %v1263_v24  ;;  %vm720_vm10 = vcmask 64544   ;;  %vm888_vm11 = vcmask 97344   ;;  %v1402_v27 = vld [vmem:[#allocation4 + $0xc] sm:$0x1] }
  0x7d   : > { %687 = vst.msk [vmem:[#allocation2 + $0x18] sm:$0xff] %vm683_vm5, %v2740_v35  ;;  %v2655_v6 = vcombine.low %v3195_v26, %v3207_v28  ;;  %vm925_vm12 = vcmask 130144   ;;  %vm962_vm13 = vcmask 162944   ;;  %vm1127_vm14 = vcmask 195744   ;;  %v1405_v35 = vld [vmem:[#allocation4 + $0x14] sm:$0x1] }
  0x7e   : > { %1144 = vrot.lane.b32.xlu1 %v2788_v22, %s2893_s12  ;;  %v1189_v37 = vrot.slane %v1188_v55, 4  ;;  %v1191_v40 = vshll.u32 %v2794_v5, 16  ;;  %vm1150_vm15 = vcmask 228544   ;;  %vm1173_vm0 = vcmask 261344   ;;  %v1376_v22 = vld [vmem:[#allocation4 + $0x8] sm:$0x1] }
  0x7f   : > { %vm1212_vm1 = vcmask 294144   ;;  %vm1248_vm2 = vcmask 293888   ;;  %vm1365_vm3 = vcmask 60416   ;;  %vm1367_vm4 = vcmask 57344   ;;  %v1379_v5 = vld [vmem:[#allocation4 + $0x10] sm:$0x1] }
  0x80   : > { %1165 = vrot.lane.b32.xlu0 %v2791_v0, %s2894_s13  ;;  %v1193_v57 = vrot.slane %v1191_v40, 5  ;;  %vm1374_vm5 = vsmask.f32 256  ;;  %v2898_v13 = vmov 0   ;;  %vm1400_vm7 = vsmask.f32 7938 }
  0x81   : > { %1366 = vst.msk [vmem:[#allocation4] sm:$0xf] %vm1365_vm3, %v2898_v13  ;;  %1370 = vst.msk [vmem:[#allocation4 + $0x48] sm:$0xf] %vm1365_vm3, %v2898_v13  ;;  %2866 = vset.pattern.permute.xlu0 %v2898_v13  ;;  %v1411_v0 = vld [vmem:[#allocation4 + $0x24] sm:$0x1] }
  0x82   : > { %1167 = vrot.lane.b32.xlu1 %v2792_v36, %s2894_s13  ;;  %v1194_v16 = vsel %vm3082_vm8, %v1189_v37, %v1193_v57  ;;  %1368 = vst.msk [vmem:[#allocation4 + $0x4] sm:$0x1] %vm1367_vm4, %v2898_v13  ;;  %1371 = vst.msk [vmem:[#allocation4 + $0x4c] sm:$0x1] %vm1367_vm4, %v2898_v13  ;;  %v1394_v37 = vld [vmem:[#allocation4 + $0x38] sm:$0x1] }
  0x83   : > { %v2656_v39 = vcombine.low %v3212_v33, %v1194_v16  ;;  %vm3323_vm6 = vmand %vm1367_vm4, %vm1374_vm5  ;;  %v1420_v40 = vld [vmem:[#allocation4 + $0x3c] sm:$0x1]  ;;  %v1388_v57 = vld [vmem:[#allocation4 + $0x28] sm:$0x1] }
  0x84   : > { %1204 = vrot.lane.b32.xlu0 %v2655_v6, %s2897_s20  ;;  %v1383_v14 = vsel %vm3323_vm6, 0, %v1382_v19  ;;  %vm3329_vm9 = vmand %vm1367_vm4, %vm1400_vm7  ;;  %v1377_v54 = vsel %vm3323_vm6, 0, %v1376_v22  ;;  %v1386_v34 = vsel %vm3323_vm6, 0, %v1385_v29  ;;  %v1380_v3 = vsel %vm3323_vm6, 0, %v1379_v5  ;;  %v1414_v16 = vld [vmem:[#allocation4 + $0x2c] sm:$0x1] }
  0x85   : > { %1384 = vst [vmem:[#allocation4 + $0x18] sm:$0x1] %v1383_v14  ;;  %v1409_v15 = vsel %vm3329_vm9, 0, %v1408_v11  ;;  %v1403_v61 = vsel %vm3329_vm9, 0, %v1402_v27  ;;  %1378 = vst [vmem:[#allocation4 + $0x8] sm:$0x1] %v1377_v54 }
  0x86   : > { %1206 = vrot.lane.b32.xlu1 %v2656_v39, %s2897_s20  ;;  %1410 = vst [vmem:[#allocation4 + $0x1c] sm:$0x1] %v1409_v15  ;;  %1404 = vst [vmem:[#allocation4 + $0xc] sm:$0x1] %v1403_v61  ;;  %v1412_v55 = vsel %vm3329_vm9, 0, %v1411_v0  ;;  %v1406_v36 = vsel %vm3329_vm9, 0, %v1405_v35 }
  0x87   : > { %1387 = vst [vmem:[#allocation4 + $0x20] sm:$0x1] %v1386_v34  ;;  %1413 = vst [vmem:[#allocation4 + $0x24] sm:$0x1] %v1412_v55  ;;  %v1395_v24 = vsel %vm3323_vm6, 0, %v1394_v37  ;;  %v1421_v6 = vsel %vm3329_vm9, 0, %v1420_v40 }
  0x88   : > { %1381 = vst [vmem:[#allocation4 + $0x10] sm:$0x1] %v1380_v3  ;;  %1407 = vst [vmem:[#allocation4 + $0x14] sm:$0x1] %v1406_v36  ;;  %v1389_v39 = vsel %vm3323_vm6, 0, %v1388_v57 }
  0x89   : > { %1396 = vst [vmem:[#allocation4 + $0x38] sm:$0x1] %v1395_v24  ;;  %1422 = vst [vmem:[#allocation4 + $0x3c] sm:$0x1] %v1421_v6 }
  0x8a   : > { %1390 = vst [vmem:[#allocation4 + $0x28] sm:$0x1] %v1389_v39 }
  0x8c   : > { %v916_v41 = vpop.permute.xlu1 %915  ;;  %v1528_v20 = vld [vmem:[#allocation4 + $0x8] sm:$0xf] }
  0x8d   : > { %v1531_v15 = vld [vmem:[#allocation4 + $0xc] sm:$0x1] }
  0x8e   : > { %v1546_v29 = vld [vmem:[#allocation4 + $0x20] sm:$0xf]  ;;  %v1549_v36 = vld [vmem:[#allocation4 + $0x24] sm:$0x1] }
  0x8f   : > { %v709_v12 = vpop.permute.xlu0 %708  ;;  %v1534_v57 = vld [vmem:[#allocation4 + $0x10] sm:$0xf] }
  0x90   : > { %721 = vst.msk [vmem:[#allocation2] sm:$0xff] %vm720_vm10, %v709_v12  ;;  %v1415_v12 = vsel %vm3329_vm9, 0, %v1414_v16 }
  0x91   : > { %1416 = vst [vmem:[#allocation4 + $0x2c] sm:$0x1] %v1415_v12 }
  0x92   : > { %v953_v26 = vpop.permute.xlu1 %952 }
  0x94   : > { %v711_v30 = vpop.permute.xlu0 %710 }
  0x95   : > { %722 = vst.msk [vmem:[#allocation2 + $0x8] sm:$0xff] %vm720_vm10, %v711_v30  ;;  %v1397_v30 = vld [vmem:[#allocation4 + $0x40] sm:$0x1] }
  0x98   : > { %v914_v28 = vpop.permute.xlu0 %913 }
  0x9a   : > { %v1141_v32 = vpop.permute.xlu1 %1140 }
  0xa0   : > { %v951_v25 = vpop.permute.xlu0 %950  ;;  %v1164_v31 = vpop.permute.xlu1 %1163 }
  0xa4   : > { %v1139_v42 = vpop.permute.xlu0 %1138 }
  0xa8   : > { %v1162_v44 = vpop.permute.xlu0 %1161 }
  0xb3   : > { %v877_v33 = vpop.permute.xlu1 %876 }
  0xb4   : > { %889 = vst.msk [vmem:[#allocation2] sm:$0xff] %vm888_vm11, %v877_v33  ;;  %v3371_v33 = vld [vmem:[%s3733_s3] ss:$0 sm:$0xff] }
  0xb5   : > { %926 = vst.msk [vmem:[#allocation2] sm:$0xff] %vm925_vm12, %v914_v28 }
  0xb6   : > { %963 = vst.msk [vmem:[#allocation2] sm:$0xff] %vm962_vm13, %v951_v25  ;;  %v1417_v25 = vld [vmem:[#allocation4 + $0x34] sm:$0x1] }
  0xb7   : > { %v879_v45 = vpop.permute.xlu1 %878 }
  0xb8   : > { %890 = vst.msk [vmem:[#allocation2 + $0x8] sm:$0xff] %vm888_vm11, %v879_v45  ;;  %v3376_v45 = vld [vmem:[%s3734_s4] ss:$0 sm:$0xff] }
  0xb9   : > { %927 = vst.msk [vmem:[#allocation2 + $0x8] sm:$0xff] %vm925_vm12, %v916_v41  ;;  %v1423_v41 = vld [vmem:[#allocation4 + $0x44] sm:$0x1] }
  0xba   : > { %964 = vst.msk [vmem:[#allocation2 + $0x8] sm:$0xff] %vm962_vm13, %v953_v26  ;;  %v1398_v26 = vsel %vm3323_vm6, 0, %v1397_v30  ;;  %v1424_v28 = vsel %vm3329_vm9, 0, %v1423_v41  ;;  %v1537_v41 = vld [vmem:[#allocation4 + $0x14] sm:$0x1] }
  0xbb   : > { %v1116_v43 = vpop.permute.xlu0 %1115  ;;  %1399 = vst [vmem:[#allocation4 + $0x40] sm:$0x1] %v1398_v26  ;;  %1425 = vst [vmem:[#allocation4 + $0x44] sm:$0x1] %v1424_v28  ;;  %v1614_v26 = vld [vmem:[#allocation4 + $0x4] sm:$0x1] }
  0xbc   : > { %1128 = vst.msk [vmem:[#allocation2] sm:$0xff] %vm1127_vm14, %v1116_v43 }
  0xbd   : > { %1151 = vst.msk [vmem:[#allocation2] sm:$0xff] %vm1150_vm15, %v1139_v42  ;;  %v1418_v42 = vsel %vm3329_vm9, 0, %v1417_v25  ;;  %vm1861_vm9 = vcmask 195712  }
  0xbe   : > { %1174 = vst.msk [vmem:[#allocation2] sm:$0xff] %vm1173_vm0, %v1162_v44  ;;  %1419 = vst [vmem:[#allocation4 + $0x34] sm:$0x1] %v1418_v42 }
  0xbf   : > { %v1201_v46 = vpop.permute.xlu0 %1200 }
  0xc0   : > { %1213 = vst.msk [vmem:[#allocation2] sm:$0xff] %vm1212_vm1, %v1201_v46 }
  0xc2   : > { %v1118_v48 = vpop.permute.xlu1 %1117 }
  0xc3   : > { %1129 = vst.msk [vmem:[#allocation2 + $0x8] sm:$0xff] %vm1127_vm14, %v1118_v48  ;;  %v713_v49 = vpop.permute.xlu0 %712 }
  0xc4   : > { %1152 = vst.msk [vmem:[#allocation2 + $0x8] sm:$0xff] %vm1150_vm15, %v1141_v32  ;;  %v1391_v32 = vld [vmem:[#allocation4 + $0x30] sm:$0x1] }
  0xc5   : > { %1175 = vst.msk [vmem:[#allocation2 + $0x8] sm:$0xff] %vm1173_vm0, %v1164_v31  ;;  %v1392_v31 = vsel %vm3323_vm6, 0, %v1391_v32 }
  0xc6   : > { %723 = vst.msk [vmem:[#allocation2 + $0x10] sm:$0xff] %vm720_vm10, %v713_v49  ;;  %v1203_v50 = vpop.permute.xlu1 %1202  ;;  %1393 = vst [vmem:[#allocation4 + $0x30] sm:$0x1] %v1392_v31 }
  0xc7   : > { %1214 = vst.msk [vmem:[#allocation2 + $0x8] sm:$0xff] %vm1212_vm1, %v1203_v50  ;;  %v1217_v51 = vld [vmem:[#allocation2] sm:$0xff] }
  0xc8   : > { %2821 = vmatprep.mubr.msk.bf16.mxu0 %vm1248_vm2, %v1217_v51  ;;  %v1613_v50 = vld [vmem:[#allocation4] sm:$0xf] }
  0xca   : > { %v715_v47 = vpop.permute.xlu1 %714 }
  0xcb   : > { %724 = vst.msk [vmem:[#allocation2 + $0x18] sm:$0xff] %vm720_vm10, %v715_v47  ;;  %vm3336_vm10 = vmand %vm1365_vm3, %vm1400_vm7 }
  0xce   : > { %v1218_v56 = vld [vmem:[#allocation2 + $0x8] sm:$0xff] }
  0xcf   : > { %v881_v58 = vpop.permute.xlu0 %880  ;;  %2822 = vmatmul.mubr.msk.bf16.vlgmr.msra.gmra.mrb[0].mxu0 %vm1248_vm2, %v1218_v56 }
  0xd0   : > { %891 = vst.msk [vmem:[#allocation2 + $0x10] sm:$0xff] %vm888_vm11, %v881_v58 }
  0xd3   : > { %v918_v59 = vpop.permute.xlu0 %917 }
  0xd4   : > { %928 = vst.msk [vmem:[#allocation2 + $0x10] sm:$0xff] %vm925_vm12, %v918_v59 }
  0xd6   : > { %v883_v60 = vpop.permute.xlu1 %882 }
  0xd7   : > { %892 = vst.msk [vmem:[#allocation2 + $0x18] sm:$0xff] %vm888_vm11, %v883_v60 }
  0xda   : > { %v920_v23 = vpop.permute.xlu1 %919 }
  0xdb   : > { %929 = vst.msk [vmem:[#allocation2 + $0x18] sm:$0xff] %vm925_vm12, %v920_v23 }
  0xdc   : > { %v955_v62 = vpop.permute.xlu0 %954 }
  0xdd   : > { %965 = vst.msk [vmem:[#allocation2 + $0x10] sm:$0xff] %vm962_vm13, %v955_v62  ;;  %v1630_v62 = vshrl.u32 %v1613_v50, 16 }
  0xdf   : > { %v1632_v27 = vrot.slane %v1630_v62, 4  ;;  %v3410_v62 = vld [vmem:[#allocation4 + $0x48] sm:$0xf] }
  0xe0   : > { %v957_v63 = vpop.permute.xlu1 %956 }
  0xe1   : > { %966 = vst.msk [vmem:[#allocation2 + $0x18] sm:$0xff] %vm962_vm13, %v957_v63 }
  0xea   : > { %v1120_v17 = vpop.permute.xlu0 %1119 }
  0xeb   : > { %1130 = vst.msk [vmem:[#allocation2 + $0x10] sm:$0xff] %vm1127_vm14, %v1120_v17 }
  0xec   : > { %v1122_v1 = vpop.permute.xlu1 %1121 }
  0xed   : > { %1131 = vst.msk [vmem:[#allocation2 + $0x18] sm:$0xff] %vm1127_vm14, %v1122_v1 }
  0xee   : > { %v1143_v2 = vpop.permute.xlu0 %1142 }
  0xef   : > { %1153 = vst.msk [vmem:[#allocation2 + $0x10] sm:$0xff] %vm1150_vm15, %v1143_v2 }
  0xf0   : > { %v1145_v4 = vpop.permute.xlu1 %1144 }
  0xf1   : > { %1154 = vst.msk [vmem:[#allocation2 + $0x18] sm:$0xff] %vm1150_vm15, %v1145_v4  ;;  %vm1802_vm15 = vcmask 1042432  }
  0xf2   : > { %v1166_v52 = vpop.permute.xlu0 %1165 }
  0xf3   : > { %1176 = vst.msk [vmem:[#allocation2 + $0x10] sm:$0xff] %vm1173_vm0, %v1166_v52  ;;  %v1633_v52 = vshll.u32 %v1613_v50, 16  ;;  %v1770_v50 = vld [vmem:[#allocation4] sm:$0xe] }
  0xf4   : > { %v1168_v7 = vpop.permute.xlu1 %1167 }
  0xf5   : > { %1177 = vst.msk [vmem:[#allocation2 + $0x18] sm:$0xff] %vm1173_vm0, %v1168_v7  ;;  %v1635_v0 = vrot.slane %v1633_v52, 5  ;;  %vm1803_vm0 = vcmask 1046532  }
  0xf6   : > { %v1205_v8 = vpop.permute.xlu0 %1204 }
  0xf7   : > { %1215 = vst.msk [vmem:[#allocation2 + $0x10] sm:$0xff] %vm1212_vm1, %v1205_v8 }
  0xf8   : > { %v1207_v9 = vpop.permute.xlu1 %1206 }
  0xf9   : > { %1216 = vst.msk [vmem:[#allocation2 + $0x18] sm:$0xff] %vm1212_vm1, %v1207_v9  ;;  %vm3402_vm1 = vmor %vm1802_vm15, %vm1803_vm0  ;;  %vm2452_vm15 = vcmask 589312   ;;  %vm2468_vm0 = vcmask 588800  }
  0xfe   : > { %v1219_v10 = vld [vmem:[#allocation2 + $0x10] sm:$0xff] }
  0xff   : > { %2825 = vmatprep.mubr.msk.bf16.mxu0 %vm1248_vm2, %v1219_v10  ;;  %v1540_v10 = vld [vmem:[#allocation4 + $0x18] sm:$0xf] }
 0x100   : > { %v1220_v53 = vld [vmem:[#allocation2 + $0x18] sm:$0xff] }
 0x101   : > { %2826 = vmatmul.mubr.msk.bf16.gmra.mrb[4].mxu0 %vm1248_vm2, %v1220_v53  ;;  %v1543_v53 = vld [vmem:[#allocation4 + $0x1c] sm:$0x1]  ;;  %vm1608_vm2 = vcmask 64512  }
 0x1a2   : > { %v2823_v44 = vpop.f32.mrb[0].mxu0 }
 0x1a3   : > { %v1308_v43 = vadd.f32 %v2823_v44, %v3371_v33  ;;  %v1299_v46 = vpop.f32.mrb[1].mxu0 }
 0x1a4   : > { %v1300_v48 = vadd.f32 %v3371_v33, %v1299_v46  ;;  %v2824_v49 = vpop.f32.mrb[2].mxu0 }
 0x1a5   : > { %vm1333_vm11 = vcmp.ge.f32.partialorder %v1308_v43, 0.0  ;;  %v1347_v51 = vmul.f32 %v3376_v45, %v1308_v43  ;;  %v1311_v47 = vadd.f32 %v2824_v49, %v3371_v33  ;;  %v1302_v56 = vpop.f32.mrb[3].mxu0  ;;  %v1639_v49 = vshll.u32 %v1614_v26, 16 }
 0x1a6   : > { %vm1331_vm12 = vcmp.ge.f32.partialorder %v1300_v48, 0.0  ;;  %v1345_v58 = vmul.f32 %v3376_v45, %v1300_v48  ;;  %v1303_v59 = vadd.f32 %v3371_v33, %v1302_v56  ;;  %v2682_v56 = vrot.slane %v1770_v50, 9 }
 0x1a7   : > { %v1355_v60 = vsel %vm1333_vm11, %v1308_v43, %v1347_v51  ;;  %vm1334_vm13 = vcmp.ge.f32.partialorder %v1311_v47, 0.0  ;;  %v1348_v23 = vmul.f32 %v3376_v45, %v1311_v47  ;;  %v1771_v51 = vld [vmem:[#allocation4 + $0x4] sm:$0x1]  ;;  %vm2063_vm11 = vcmask 326912  }
 0x1a8   : > { %v2797_v63 = vpack.c.bf16 %v1355_v60, %v1355_v60  ;;  %v1353_v17 = vsel %vm1331_vm12, %v1300_v48, %v1345_v58  ;;  %vm1332_vm14 = vcmp.ge.f32.partialorder %v1303_v59, 0.0  ;;  %v1346_v1 = vmul.f32 %v3376_v45, %v1303_v59 }
 0x1a9   : > { %v2795_v2 = vpack.c.bf16 %v1353_v17, %v1353_v17  ;;  %v1356_v4 = vsel %vm1334_vm13, %v1311_v47, %v1348_v23  ;;  %v1636_v48 = vor.u32 %v1635_v0, %v1632_v27  ;;  %v1807_v58 = vrot.slane %v1771_v51, 5 }
 0x1aa   : > { %v1463_v7 = vshrl.u32 %v2797_v63, 16  ;;  %v2798_v8 = vpack.c.bf16 %v1356_v4, %v1356_v4  ;;  %v1354_v9 = vsel %vm1332_vm14, %v1303_v59, %v1346_v1  ;;  %v1466_v14 = vshll.u32 %v2797_v63, 16 }
 0x1ab   : > { %v1447_v13 = vshrl.u32 %v2795_v2, 16  ;;  %v2796_v19 = vpack.c.bf16 %v1354_v9, %v1354_v9  ;;  %v1450_v61 = vshll.u32 %v2795_v2, 16  ;;  %v3406_v59 = vrot.slane %v1636_v48, 4 }
 0x1ac   : > { %v1465_v11 = vrot.slane %v1463_v7, 7  ;;  %v1471_v22 = vshrl.u32 %v2798_v8, 16  ;;  %v1474_v35 = vshll.u32 %v2798_v8, 16  ;;  %v3408_v60 = vrot.slane %v1639_v49, 5 }
 0x1ad   : > { %v1449_v54 = vrot.slane %v1447_v13, 7  ;;  %v1455_v34 = vshrl.u32 %v2796_v19, 16  ;;  %v1458_v6 = vshll.u32 %v2796_v19, 16  ;;  %v1808_v8 = vsel %vm3402_vm1, %v2682_v56, %v1807_v58 }
 0x1ae   : > { %v1468_v5 = vor.u32 %v1466_v14, %v1465_v11  ;;  %v1469_v55 = vrot.slane %v1465_v11, 4  ;;  %v1473_v3 = vrot.slane %v1471_v22, 7  ;;  %vm2156_vm12 = vcmask 392512  }
 0x1af   : > { %v1452_v37 = vor.u32 %v1450_v61, %v1449_v54  ;;  %v1453_v40 = vrot.slane %v1449_v54, 4  ;;  %v1457_v24 = vrot.slane %v1455_v34, 7  ;;  %v2325_v54 = vshll.u32 %v3410_v62, 16 }
 0x1b0   : > { %v1541_v16 = vsel %vm3336_vm10, %v1468_v5, %v1540_v10  ;;  %v1544_v39 = vsel %vm3323_vm6, %v1469_v55, %v1543_v53  ;;  %v1476_v12 = vor.u32 %v1474_v35, %v1473_v3  ;;  %v1477_v30 = vrot.slane %v1473_v3, 4 }
 0x1b1   : > { %1542 = vst [vmem:[#allocation4 + $0x18] sm:$0xf] %v1541_v16  ;;  %1545 = vst [vmem:[#allocation4 + $0x1c] sm:$0x1] %v1544_v39  ;;  %v1529_v28 = vsel %vm3336_vm10, %v1452_v37, %v1528_v20  ;;  %v1532_v32 = vsel %vm3323_vm6, %v1453_v40, %v1531_v15  ;;  %v1460_v25 = vor.u32 %v1458_v6, %v1457_v24  ;;  %v1461_v31 = vrot.slane %v1457_v24, 4 }
 0x1b2   : > { %1530 = vst [vmem:[#allocation4 + $0x8] sm:$0xf] %v1529_v28  ;;  %1533 = vst [vmem:[#allocation4 + $0xc] sm:$0x1] %v1532_v32  ;;  %v1547_v42 = vsel %vm3336_vm10, %v1476_v12, %v1546_v29  ;;  %v1550_v44 = vsel %vm3323_vm6, %v1477_v30, %v1549_v36  ;;  %v2322_v20 = vshrl.u32 %v3410_v62, 16  ;;  %vm2202_vm13 = vcmask 458112  }
 0x1b3   : > { %1548 = vst [vmem:[#allocation4 + $0x20] sm:$0xf] %v1547_v42  ;;  %1551 = vst [vmem:[#allocation4 + $0x24] sm:$0x1] %v1550_v44  ;;  %v1535_v43 = vsel %vm3336_vm10, %v1460_v25, %v1534_v57  ;;  %v1538_v46 = vsel %vm3323_vm6, %v1461_v31, %v1537_v41  ;;  %vm2359_vm14 = vcmask 523712  }
 0x1b4   : > { %1536 = vst [vmem:[#allocation4 + $0x10] sm:$0xf] %v1535_v43  ;;  %1539 = vst [vmem:[#allocation4 + $0x14] sm:$0x1] %v1538_v46 }
 0x1b8   : > { %v2072_v23 = vld [vmem:[#allocation4 + $0x18] sm:$0xe]  ;;  %v2073_v10 = vld [vmem:[#allocation4 + $0x1c] sm:$0x1] }
 0x1b9   : > { %v1772_v63 = vld [vmem:[#allocation4 + $0x8] sm:$0xe]  ;;  %v1773_v17 = vld [vmem:[#allocation4 + $0xc] sm:$0x1]  ;;  %v2704_v19 = vrot.slane %v2072_v23, 9  ;;  %v2110_v11 = vrot.slane %v2073_v10, 5 }
 0x1ba   : > { %v2870_v1 = vld [vmem:[#allocation4 + $0x18] ss:$8 sps:$4 sm:$0xff]   ;;  %v2683_v2 = vrot.slane %v1772_v63, 9  ;;  %v1811_v4 = vrot.slane %v1773_v17, 5  ;;  %v2075_v13 = vld [vmem:[#allocation4 + $0x24] sm:$0x1] }
 0x1bb   : > { %v2871_v52 = vld [vmem:[#allocation4 + $0x10] ss:$8 sps:$4 sm:$0xff]   ;;  %1896 = vrot.lane.b32.xlu0 %v2870_v1, %s2893_s12  ;;  %v2074_v53 = vld [vmem:[#allocation4 + $0x20] sm:$0xe]  ;;  %v2114_v15 = vrot.slane %v2075_v13, 5  ;;  %v2111_v40 = vsel %vm3402_vm1, %v2704_v19, %v2110_v11 }
 0x1bc   : > { %v2872_v7 = vld [vmem:[#allocation4 + $0x8] ss:$8 sps:$4 sm:$0xff]   ;;  %v1812_v9 = vsel %vm3402_vm1, %v2683_v2, %v1811_v4  ;;  %2190 = vrot.lane.b32.xlu1 %v2871_v52, %s2899_s29  ;;  %v2705_v14 = vrot.slane %v2074_v53, 9  ;;  %v2365_v27 = vld [vmem:[#allocation4 + $0x14] sm:$0x1] }
 0x1bd   : > { %v2364_v22 = vld [vmem:[#allocation4 + $0x10] sm:$0xe]  ;;  %v2690_v61 = vcombine.low %v1808_v8, %v1812_v9  ;;  %v2366_v29 = vld [vmem:[#allocation4 + $0x18] sm:$0xe]  ;;  %v2367_v34 = vld [vmem:[#allocation4 + $0x1c] sm:$0x1] }
 0x1be   : > { %v2722_v0 = vrot.slane %v2364_v22, 9  ;;  %v2398_v5 = vrot.slane %v2365_v27, 5  ;;  %v2115_v55 = vsel %vm3402_vm1, %v2705_v14, %v2114_v15  ;;  %v2723_v3 = vrot.slane %v2366_v29, 9  ;;  %v2068_v36 = vld [vmem:[#allocation4 + $0x8] sm:$0xe] }
 0x1bf   : > { %1894 = vrot.lane.b32.xlu0 %v2872_v7, %s2893_s12  ;;  %v2402_v35 = vrot.slane %v2367_v34, 5  ;;  %v2069_v37 = vld [vmem:[#allocation4 + $0xc] sm:$0x1]  ;;  %v2070_v6 = vld [vmem:[#allocation4 + $0x10] sm:$0xe]  ;;  %v2702_v16 = vrot.slane %v2068_v36, 9  ;;  %v2711_v12 = vcombine.low %v2111_v40, %v2115_v55  ;;  %v1642_v15 = vsel %vm3082_vm8, %v3406_v59, %v3408_v60 }
 0x1c0   : > { %1849 = vrot.lane.b32.xlu1 %v2690_v61, %s2892_s11  ;;  %v2399_v24 = vsel %vm3402_vm1, %v2722_v0, %v2398_v5  ;;  %v2071_v57 = vld [vmem:[#allocation4 + $0x14] sm:$0x1]  ;;  %v2102_v39 = vrot.slane %v2069_v37, 5  ;;  %v2703_v41 = vrot.slane %v2070_v6, 9  ;;  %v1774_v28 = vld [vmem:[#allocation4 + $0x10] sm:$0xe] }
 0x1c1   : > { %v2403_v30 = vsel %vm3402_vm1, %v2723_v3, %v2402_v35  ;;  %v2106_v26 = vrot.slane %v2071_v57, 5  ;;  %v1775_v32 = vld [vmem:[#allocation4 + $0x14] sm:$0x1]  ;;  %v1776_v31 = vld [vmem:[#allocation4 + $0x18] sm:$0xe]  ;;  %v2684_v44 = vrot.slane %v1774_v28, 9 }
 0x1c2   : > { %v2730_v25 = vcombine.low %v2399_v24, %v2403_v30  ;;  %v1777_v42 = vld [vmem:[#allocation4 + $0x1c] sm:$0x1]  ;;  %v1815_v43 = vrot.slane %v1775_v32, 5  ;;  %v2685_v48 = vrot.slane %v1776_v31, 9  ;;  %v1615_v50 = vld [vmem:[#allocation4 + $0x8] sm:$0xf]  ;;  %v2103_v56 = vsel %vm3402_vm1, %v2702_v16, %v2102_v39 }
 0x1c3   : > { %2146 = vrot.lane.b32.xlu0 %v2711_v12, %s2900_s30  ;;  %v2107_v46 = vsel %vm3402_vm1, %v2703_v41, %v2106_v26  ;;  %v1819_v49 = vrot.slane %v1777_v42, 5  ;;  %v1616_v51 = vld [vmem:[#allocation4 + $0xc] sm:$0x1]  ;;  %v1644_v23 = vshrl.u32 %v1615_v50, 16  ;;  %v1647_v63 = vshll.u32 %v1615_v50, 16 }
 0x1c4   : > { %2440 = vrot.lane.b32.xlu1 %v2730_v25, %s2901_s8  ;;  %v1816_v58 = vsel %vm3402_vm1, %v2684_v44, %v1815_v43  ;;  %v1915_v17 = vld [vmem:[#allocation4 + $0x18] sm:$0xf]  ;;  %v2710_v1 = vcombine.low %v2103_v56, %v2107_v46  ;;  %v1653_v4 = vshll.u32 %v1616_v51, 16  ;;  %v1917_v52 = vld [vmem:[#allocation4 + $0x20] sm:$0xf]  ;;  %v2324_v61 = vrot.slane %v2322_v20, 4 }
 0x1c5   : > { %v1820_v2 = vsel %vm3402_vm1, %v2685_v48, %v1819_v49  ;;  %v1956_v7 = vshrl.u32 %v1915_v17, 16  ;;  %v1646_v9 = vrot.slane %v1644_v23, 4  ;;  %v1649_v10 = vrot.slane %v1647_v63, 5  ;;  %v2207_v14 = vld [vmem:[#allocation4 + $0x10] sm:$0xf] }
 0x1c6   : > { %v2691_v8 = vcombine.low %v1816_v58, %v1820_v2  ;;  %v1959_v53 = vshll.u32 %v1915_v17, 16  ;;  %v1970_v13 = vshrl.u32 %v1917_v52, 16  ;;  %v1973_v11 = vshll.u32 %v1917_v52, 16  ;;  %v2209_v27 = vld [vmem:[#allocation4 + $0x18] sm:$0xf] }
 0x1c7   : > { %2144 = vrot.lane.b32.xlu0 %v2710_v1, %s2900_s30  ;;  %v1650_v19 = vor.u32 %v1649_v10, %v1646_v9  ;;  %v1655_v22 = vrot.slane %v1653_v4, 5  ;;  %v2327_v29 = vrot.slane %v2325_v54, 5  ;;  %v1916_v0 = vld [vmem:[#allocation4 + $0x1c] sm:$0x1]  ;;  %v1958_v5 = vrot.slane %v1956_v7, 4 }
 0x1c8   : > { %1851 = vrot.lane.b32.xlu1 %v2691_v8, %s2892_s11  ;;  %v1961_v55 = vrot.slane %v1959_v53, 5  ;;  %v1972_v3 = vrot.slane %v1970_v13, 4  ;;  %v1918_v35 = vld [vmem:[#allocation4 + $0x24] sm:$0x1]  ;;  %v1975_v36 = vrot.slane %v1973_v11, 5  ;;  %v2224_v37 = vshrl.u32 %v2207_v14, 16 }
 0x1c9   : > { %v1651_v34 = vrot.slane %v1650_v19, 4  ;;  %v2227_v40 = vshll.u32 %v2207_v14, 16  ;;  %v2238_v24 = vshrl.u32 %v2209_v27, 16  ;;  %v2208_v59 = vld [vmem:[#allocation4 + $0x14] sm:$0x1]  ;;  %v2241_v60 = vshll.u32 %v2209_v27, 16 }
 0x1ca   : > { %v2210_v16 = vld [vmem:[#allocation4 + $0x1c] sm:$0x1]  ;;  %v2226_v62 = vrot.slane %v2224_v37, 4  ;;  %v3450_v54 = vld [vmem:[#allocation4 + $0x4c] sm:$0x1]  ;;  %v2328_v39 = vor.u32 %v2327_v29, %v2324_v61  ;;  %v1965_v12 = vshll.u32 %v1916_v0, 16  ;;  %v1962_v32 = vor.u32 %v1961_v55, %v1958_v5 }
 0x1cb   : > { %v1656_v6 = vsel %vm3082_vm8, %v1651_v34, %v1655_v22  ;;  %v2229_v20 = vrot.slane %v2227_v40, 5  ;;  %v1979_v30 = vshll.u32 %v1918_v35, 16  ;;  %v2240_v41 = vrot.slane %v2238_v24, 4  ;;  %v1911_v28 = vld [vmem:[#allocation4 + $0x8] sm:$0xf] }
 0x1cc   : > { %v2678_v57 = vcombine.low %v1642_v15, %v1656_v6  ;;  %v2243_v26 = vrot.slane %v2241_v60, 5  ;;  %v1976_v25 = vor.u32 %v1975_v36, %v1972_v3  ;;  %v2233_v31 = vshll.u32 %v2208_v59, 16  ;;  %v1913_v42 = vld [vmem:[#allocation4 + $0x10] sm:$0xf]  ;;  %v1912_v49 = vld [vmem:[#allocation4 + $0xc] sm:$0x1] }
 0x1cd   : > { %v2230_v44 = vor.u32 %v2229_v20, %v2226_v62  ;;  %v2247_v43 = vshll.u32 %v2210_v16, 16  ;;  %v2331_v46 = vshll.u32 %v3450_v54, 16  ;;  %v1928_v50 = vshrl.u32 %v1911_v28, 16  ;;  %v1617_v51 = vld [vmem:[#allocation4 + $0x10] sm:$0xf] }
 0x1ce   : > { %1753 = vrot.lane.b32.xlu0 %v2678_v57, %s2895_s14  ;;  %v2244_v48 = vor.u32 %v2243_v26, %v2240_v41  ;;  %v3454_v56 = vrot.slane %v2328_v39, 4  ;;  %v3456_v58 = vrot.slane %v1965_v12, 5  ;;  %v3458_v23 = vrot.slane %v1979_v30, 5  ;;  %v1914_v52 = vld [vmem:[#allocation4 + $0x14] sm:$0x1] }
 0x1cf   : > { %v1931_v63 = vshll.u32 %v1911_v28, 16  ;;  %v1942_v17 = vshrl.u32 %v1913_v42, 16  ;;  %v3460_v1 = vrot.slane %v1962_v32, 4  ;;  %v3462_v2 = vrot.slane %v1976_v25, 4  ;;  %v3484_v36 = vld [vmem:[#allocation4 + $0x14] sm:$0x1] }
 0x1d0   : > { %v3464_v4 = vrot.slane %v2233_v31, 5  ;;  %v1945_v7 = vshll.u32 %v1913_v42, 16  ;;  %v3466_v9 = vrot.slane %v2230_v44, 4  ;;  %v3468_v10 = vrot.slane %v2247_v43, 5  ;;  %v2878_v6 = vld [vmem:[#allocation4] ss:$8 sps:$4 sm:$0xff]  }
 0x1d1   : > { %v1937_v53 = vshll.u32 %v1912_v49, 16  ;;  %v1658_v13 = vshrl.u32 %v1617_v51, 16  ;;  %v3471_v14 = vrot.slane %v2244_v48, 4  ;;  %v3473_v15 = vrot.slane %v1928_v50, 4  ;;  %v2879_v16 = vld [vmem:[#allocation4 + $0x10] ss:$8 sps:$4 sm:$0xff]  }
 0x1d2   : > { %v1661_v22 = vshll.u32 %v1617_v51, 16  ;;  %v3476_v29 = vrot.slane %v1931_v63, 5  ;;  %v3478_v34 = vrot.slane %v1942_v17, 4  ;;  %v1951_v0 = vshll.u32 %v1914_v52, 16  ;;  %1609 = vst.msk [vmem:[#allocation3] sm:$0xff] %vm1608_vm2, %v2878_v6  ;;  %1610 = vst.msk [vmem:[#allocation3 + $0x8] sm:$0xff] %vm1608_vm2, %v2879_v16 }
 0x1d3   : > { %v3482_v35 = vrot.slane %v1945_v7, 5  ;;  %v3488_v24 = vrot.slane %v1658_v13, 4  ;;  %v3497_v41 = vrot.slane %v1937_v53, 5  ;;  %v1667_v25 = vshll.u32 %v3484_v36, 16  ;;  %v1564_v31 = vld [vmem:[#allocation4 + $0x38] sm:$0xf] }
 0x1d4   : > { %v2827_v8 = vpop.f32.mrb[4].mxu0  ;;  %v3491_v57 = vrot.slane %v1661_v22, 5  ;;  %v1567_v42 = vld [vmem:[#allocation4 + $0x3c] sm:$0x1]  ;;  %v3503_v48 = vrot.slane %v1951_v0, 5 }
 0x1d5   : > { %v1324_v19 = vadd.f32 %v2827_v8, %v3371_v33  ;;  %v1315_v11 = vpop.f32.mrb[5].mxu0  ;;  %v1948_v43 = vor.u32 %v3482_v35, %v3478_v34  ;;  %v1552_v51 = vld [vmem:[#allocation4 + $0x28] sm:$0xf]  ;;  %v1555_v63 = vld [vmem:[#allocation4 + $0x2c] sm:$0x1] }
 0x1d6   : > { %v1316_v27 = vadd.f32 %v3371_v33, %v1315_v11  ;;  %v2828_v61 = vpop.f32.mrb[6].mxu0  ;;  %v1619_v52 = vld [vmem:[#allocation4 + $0x18] sm:$0xf]  ;;  %v1664_v7 = vor.u32 %v3491_v57, %v3488_v24  ;;  %v1561_v24 = vld [vmem:[#allocation4 + $0x34] sm:$0x1] }
 0x1d7   : > { %vm1337_vm3 = vcmp.ge.f32.partialorder %v1324_v19, 0.0  ;;  %v1351_v5 = vmul.f32 %v3376_v45, %v1324_v19  ;;  %v1327_v55 = vadd.f32 %v2828_v61, %v3371_v33  ;;  %v1318_v3 = vpop.f32.mrb[7].mxu0  ;;  %v1573_v61 = vld [vmem:[#allocation4 + $0x44] sm:$0x1]  ;;  %v1620_v6 = vld [vmem:[#allocation4 + $0x1c] sm:$0x1] }
 0x1d8   : > { %vm1335_vm4 = vcmp.ge.f32.partialorder %v1316_v27, 0.0  ;;  %v1349_v37 = vmul.f32 %v3376_v45, %v1316_v27  ;;  %v1319_v40 = vadd.f32 %v3371_v33, %v1318_v3  ;;  %v1934_v33 = vor.u32 %v3476_v29, %v3473_v15 }
 0x1d9   : > { %v1359_v59 = vsel %vm1337_vm3, %v1324_v19, %v1351_v5  ;;  %vm1338_vm5 = vcmp.ge.f32.partialorder %v1327_v55, 0.0  ;;  %v1352_v60 = vmul.f32 %v3376_v45, %v1327_v55  ;;  %v1570_v19 = vld [vmem:[#allocation4 + $0x40] sm:$0xf]  ;;  %v1672_v3 = vshrl.u32 %v1619_v52, 16 }
 0x1da   : > { %v2801_v62 = vpack.c.bf16 %v1359_v59, %v1359_v59  ;;  %v1357_v20 = vsel %vm1335_vm4, %v1316_v27, %v1349_v37  ;;  %vm1336_vm7 = vcmp.ge.f32.partialorder %v1319_v40, 0.0  ;;  %v1350_v39 = vmul.f32 %v3376_v45, %v1319_v40 }
 0x1db   : > { %v2799_v12 = vpack.c.bf16 %v1357_v20, %v1357_v20  ;;  %v1360_v30 = vsel %vm1338_vm5, %v1327_v55, %v1352_v60  ;;  %v1558_v55 = vld [vmem:[#allocation4 + $0x30] sm:$0xf]  ;;  %v3517_v20 = vld [vmem:[#allocation4 + $0x24] sm:$0x1] }
 0x1dc   : > { %v1495_v26 = vshrl.u32 %v2801_v62, 16  ;;  %v2802_v28 = vpack.c.bf16 %v1360_v30, %v1360_v30  ;;  %v1358_v32 = vsel %vm1336_vm7, %v1319_v40, %v1350_v39  ;;  %v1498_v50 = vshll.u32 %v2801_v62, 16  ;;  %v3515_v62 = vld [vmem:[#allocation4 + $0x20] sm:$0xe] }
 0x1dd   : > { %v1479_v44 = vshrl.u32 %v2799_v12, 16  ;;  %v2800_v45 = vpack.c.bf16 %v1358_v32, %v1358_v32  ;;  %v1482_v53 = vshll.u32 %v2799_v12, 16  ;;  %v1935_v30 = vrot.slane %v1934_v33, 4  ;;  %v2212_v32 = vld [vmem:[#allocation4 + $0x24] sm:$0x1] }
 0x1de   : > { %v1497_v49 = vrot.slane %v1495_v26, 7  ;;  %v1503_v17 = vshrl.u32 %v2802_v28, 16  ;;  %v1506_v13 = vshll.u32 %v2802_v28, 16  ;;  %v1675_v26 = vshll.u32 %v1619_v52, 16  ;;  %v2211_v28 = vld [vmem:[#allocation4 + $0x20] sm:$0xf] }
 0x1df   : > { %v1481_v8 = vrot.slane %v1479_v44, 7  ;;  %v1487_v11 = vshrl.u32 %v2800_v45, 16  ;;  %v1490_v29 = vshll.u32 %v2800_v45, 16  ;;  %v1674_v44 = vrot.slane %v1672_v3, 4  ;;  %v1621_v52 = vld [vmem:[#allocation4 + $0x20] sm:$0xf] }
 0x1e0   : > { %v1500_v15 = vor.u32 %v1498_v50, %v1497_v49  ;;  %v1501_v22 = vrot.slane %v1497_v49, 4  ;;  %v1505_v27 = vrot.slane %v1503_v17, 7  ;;  %v1681_v45 = vshll.u32 %v1620_v6, 16  ;;  %v3527_v49 = vld [vmem:[#allocation4 + $0x20] sm:$0xe] }
 0x1e1   : > { %v1484_v34 = vor.u32 %v1482_v53, %v1481_v8  ;;  %v1485_v0 = vrot.slane %v1481_v8, 4  ;;  %v1489_v5 = vrot.slane %v1487_v11, 7  ;;  %v1779_v50 = vld [vmem:[#allocation4 + $0x24] sm:$0x1]  ;;  %v3529_v33 = vrot.slane %v1664_v7, 4 }
 0x1e2   : > { %v1565_v35 = vsel %vm3336_vm10, %v1500_v15, %v1564_v31  ;;  %v1568_v36 = vsel %vm3323_vm6, %v1501_v22, %v1567_v42  ;;  %v1508_v37 = vor.u32 %v1506_v13, %v1505_v27  ;;  %v1509_v40 = vrot.slane %v1505_v27, 4 }
 0x1e3   : > { %1566 = vst [vmem:[#allocation4 + $0x38] sm:$0xf] %v1565_v35  ;;  %1569 = vst [vmem:[#allocation4 + $0x3c] sm:$0x1] %v1568_v36  ;;  %v1553_v59 = vsel %vm3336_vm10, %v1484_v34, %v1552_v51  ;;  %v1556_v60 = vsel %vm3323_vm6, %v1485_v0, %v1555_v63  ;;  %v1492_v57 = vor.u32 %v1490_v29, %v1489_v5  ;;  %v1493_v16 = vrot.slane %v1489_v5, 4 }
 0x1e4   : > { %1554 = vst [vmem:[#allocation4 + $0x28] sm:$0xf] %v1553_v59  ;;  %1557 = vst [vmem:[#allocation4 + $0x2c] sm:$0x1] %v1556_v60  ;;  %v1571_v39 = vsel %vm3336_vm10, %v1508_v37, %v1570_v19  ;;  %v1574_v12 = vsel %vm3323_vm6, %v1509_v40, %v1573_v61  ;;  %v1949_v51 = vrot.slane %v1948_v43, 4  ;;  %v3531_v63 = vrot.slane %v1667_v25, 5 }
 0x1e5   : > { %1572 = vst [vmem:[#allocation4 + $0x40] sm:$0xf] %v1571_v39  ;;  %1575 = vst [vmem:[#allocation4 + $0x44] sm:$0x1] %v1574_v12  ;;  %v1559_v31 = vsel %vm3336_vm10, %v1492_v57, %v1558_v55  ;;  %v1562_v42 = vsel %vm3323_vm6, %v1493_v16, %v1561_v24  ;;  %v1677_v17 = vrot.slane %v1675_v26, 5  ;;  %v2724_v21 = vrot.slane %v3515_v62, 9 }
 0x1e6   : > { %1560 = vst [vmem:[#allocation4 + $0x30] sm:$0xf] %v1559_v31  ;;  %1563 = vst [vmem:[#allocation4 + $0x34] sm:$0x1] %v1562_v42  ;;  %v2252_v8 = vshrl.u32 %v2211_v28, 16  ;;  %v2255_v53 = vshll.u32 %v2211_v28, 16  ;;  %v1982_v25 = vsel %vm3082_vm8, %v3462_v2, %v3458_v23  ;;  %v1968_v55 = vsel %vm3082_vm8, %v3460_v1, %v3456_v58 }
 0x1e7   : > { %v2261_v18 = vshll.u32 %v2212_v32, 16  ;;  %v3534_v13 = vrot.slane %v1681_v45, 5  ;;  %v2406_v19 = vrot.slane %v3517_v20, 5  ;;  %v2686_v11 = vrot.slane %v3527_v49, 9 }
 0x1e8   : > { %v1823_v15 = vrot.slane %v1779_v50, 5  ;;  %v1678_v22 = vor.u32 %v1677_v17, %v1674_v44  ;;  %v2254_v43 = vrot.slane %v2252_v8, 4  ;;  %v2257_v7 = vrot.slane %v2255_v53, 5 }
 0x1e9   : > { %v1686_v27 = vshrl.u32 %v1621_v52, 16  ;;  %v3542_v61 = vrot.slane %v2261_v18, 5  ;;  %v1689_v29 = vshll.u32 %v1621_v52, 16  ;;  %v2236_v3 = vsel %vm3082_vm8, %v3466_v9, %v3464_v4 }
 0x1ea   : > { %v2258_v0 = vor.u32 %v2257_v7, %v2254_v43  ;;  %v1954_v23 = vsel %vm3082_vm8, %v1949_v51, %v3503_v48  ;;  %v2699_v35 = vcombine.low %v1968_v55, %v1982_v25  ;;  %v1679_v36 = vrot.slane %v1678_v22, 4  ;;  %v2374_v22 = vld [vmem:[#allocation4 + $0x38] sm:$0xe]  ;;  %v2375_v43 = vld [vmem:[#allocation4 + $0x3c] sm:$0x1] }
 0x1eb   : > { %v2873_v34 = vld [vmem:[#allocation4 + $0x20] ss:$8 sps:$4 sm:$0xff]   ;;  %v1688_v37 = vrot.slane %v1686_v27, 4  ;;  %v2250_v58 = vsel %vm3082_vm8, %v3471_v14, %v3468_v10  ;;  %v1940_v1 = vsel %vm3082_vm8, %v1935_v30, %v3497_v41  ;;  %v2371_v4 = vld [vmem:[#allocation4 + $0x2c] sm:$0x1]  ;;  %v1691_v16 = vrot.slane %v1689_v29, 5 }
 0x1ec   : > { %v2874_v5 = vld [vmem:[#allocation4 + $0x38] ss:$8 sps:$4 sm:$0xff]   ;;  %v2370_v2 = vld [vmem:[#allocation4 + $0x28] sm:$0xe]  ;;  %2192 = vrot.lane.b32.xlu1 %v2873_v34, %s2899_s29  ;;  %v3564_v48 = vrot.slane %v2258_v0, 4  ;;  %v2718_v24 = vcombine.low %v2236_v3, %v2250_v58  ;;  %v2698_v6 = vcombine.low %v1940_v1, %v1954_v23  ;;  %v2410_v59 = vrot.slane %v2371_v4, 5 }
 0x1ed   : > { %1900 = vrot.lane.b32.xlu0 %v2874_v5, %s2893_s12  ;;  %v2875_v40 = vld [vmem:[#allocation4 + $0x28] ss:$8 sps:$4 sm:$0xff]   ;;  %v2725_v9 = vrot.slane %v2370_v2, 9  ;;  %v2077_v57 = vld [vmem:[#allocation4 + $0x2c] sm:$0x1]  ;;  %v1670_v62 = vsel %vm3082_vm8, %v3529_v33, %v3531_v63  ;;  %v3572_v10 = vsel %vm3402_vm1, %v2724_v21, %v2406_v19  ;;  %v3581_v42 = vsel %vm3402_vm1, %v2686_v11, %v1823_v15 }
 0x1ee   : > { %v2076_v60 = vld [vmem:[#allocation4 + $0x28] sm:$0xe]  ;;  %v2078_v14 = vld [vmem:[#allocation4 + $0x30] sm:$0xe]  ;;  %v2079_v41 = vld [vmem:[#allocation4 + $0x34] sm:$0x1]  ;;  %v1684_v44 = vsel %vm3082_vm8, %v1679_v36, %v3534_v13  ;;  %v1692_v63 = vor.u32 %v1691_v16, %v1688_v37  ;;  %v2264_v11 = vsel %vm3082_vm8, %v3564_v48, %v3542_v61 }
 0x1ef   : > { %v2706_v20 = vrot.slane %v2076_v60, 9  ;;  %v2118_v39 = vrot.slane %v2077_v57, 5  ;;  %v2876_v12 = vld [vmem:[#allocation4 + $0x30] ss:$8 sps:$4 sm:$0xff]   ;;  %v3577_v30 = vsel %vm3402_vm1, %v2725_v9, %v2410_v59  ;;  %v2707_v26 = vrot.slane %v2078_v14, 9 }
 0x1f0   : > { %2053 = vrot.lane.b32.xlu1 %v2699_v35, %s2897_s20  ;;  %v2122_v28 = vrot.slane %v2079_v41, 5  ;;  %v1780_v32 = vld [vmem:[#allocation4 + $0x28] sm:$0xe]  ;;  %v1781_v31 = vld [vmem:[#allocation4 + $0x2c] sm:$0x1]  ;;  %v2679_v18 = vcombine.low %v1670_v62, %v1684_v44  ;;  %v2731_v19 = vcombine.low %v3572_v10, %v3577_v30  ;;  %v2727_v61 = vrot.slane %v2374_v22, 9 }
 0x1f1   : > { %1898 = vrot.lane.b32.xlu0 %v2875_v40, %s2893_s12  ;;  %v2687_v45 = vrot.slane %v1780_v32, 9  ;;  %v1827_v49 = vrot.slane %v1781_v31, 5  ;;  %v2213_v50 = vld [vmem:[#allocation4 + $0x28] sm:$0xf]  ;;  %v2214_v51 = vld [vmem:[#allocation4 + $0x2c] sm:$0x1]  ;;  %v2119_v13 = vsel %vm3402_vm1, %v2706_v20, %v2118_v39 }
 0x1f2   : > { %v1622_v33 = vld [vmem:[#allocation4 + $0x24] sm:$0x1]  ;;  %v3589_v17 = vsel %vm3402_vm1, %v2707_v26, %v2122_v28  ;;  %v2266_v52 = vshrl.u32 %v2213_v50, 16  ;;  %v2269_v21 = vshll.u32 %v2213_v50, 16  ;;  %v2275_v8 = vshll.u32 %v2214_v51, 16 }
 0x1f3   : > { %v2372_v53 = vld [vmem:[#allocation4 + $0x30] sm:$0xe]  ;;  %v2373_v15 = vld [vmem:[#allocation4 + $0x34] sm:$0x1]  ;;  %v2712_v7 = vcombine.low %v2119_v13, %v3589_v17  ;;  %v3603_v27 = vsel %vm3402_vm1, %v2687_v45, %v1827_v49  ;;  %v1623_v34 = vld [vmem:[#allocation4 + $0x28] sm:$0xf] }
 0x1f4   : > { %2194 = vrot.lane.b32.xlu1 %v2876_v12, %s2899_s29  ;;  %v2268_v25 = vrot.slane %v2266_v52, 4  ;;  %v2271_v29 = vrot.slane %v2269_v21, 5  ;;  %v2726_v0 = vrot.slane %v2372_v53, 9  ;;  %v2414_v5 = vrot.slane %v2373_v15, 5  ;;  %v1624_v3 = vld [vmem:[#allocation4 + $0x2c] sm:$0x1] }
 0x1f5   : > { %2347 = vrot.lane.b32.xlu0 %v2718_v24, %s2902_s9  ;;  %v2418_v55 = vrot.slane %v2375_v43, 5  ;;  %v1693_v2 = vrot.slane %v1692_v63, 4  ;;  %v1695_v35 = vshll.u32 %v1622_v33, 16  ;;  %v1700_v36 = vshrl.u32 %v1623_v34, 16  ;;  %v1782_v37 = vld [vmem:[#allocation4 + $0x30] sm:$0xe] }
 0x1f6   : > { %v2272_v23 = vor.u32 %v2271_v29, %v2268_v25  ;;  %v2692_v40 = vcombine.low %v3581_v42, %v3603_v27  ;;  %v3610_v58 = vsel %vm3402_vm1, %v2726_v0, %v2414_v5  ;;  %v1703_v1 = vshll.u32 %v1623_v34, 16  ;;  %v1783_v9 = vld [vmem:[#allocation4 + $0x34] sm:$0x1]  ;;  %v1784_v48 = vld [vmem:[#allocation4 + $0x38] sm:$0xe] }
 0x1f7   : > { %v1709_v4 = vshll.u32 %v1624_v3, 16  ;;  %v2277_v59 = vrot.slane %v2275_v8, 5  ;;  %v2419_v60 = vsel %vm3402_vm1, %v2727_v61, %v2418_v55  ;;  %v1702_v57 = vrot.slane %v1700_v36, 4  ;;  %v1785_v16 = vld [vmem:[#allocation4 + $0x3c] sm:$0x1] }
 0x1f8   : > { %2051 = vrot.lane.b32.xlu1 %v2698_v6, %s2897_s20  ;;  %v2273_v24 = vrot.slane %v2272_v23, 4  ;;  %v1697_v62 = vrot.slane %v1695_v35, 5  ;;  %v1705_v10 = vrot.slane %v1703_v1, 5  ;;  %v2688_v14 = vrot.slane %v1782_v37, 9  ;;  %v2215_v20 = vld [vmem:[#allocation4 + $0x30] sm:$0xf] }
 0x1f9   : > { %1755 = vrot.lane.b32.xlu0 %v2679_v18, %s2895_s14  ;;  %v1831_v41 = vrot.slane %v1783_v9, 5  ;;  %v2732_v12 = vcombine.low %v3610_v58, %v2419_v60  ;;  %v2689_v6 = vrot.slane %v1784_v48, 9  ;;  %v1835_v30 = vrot.slane %v1785_v16, 5  ;;  %v2216_v26 = vld [vmem:[#allocation4 + $0x34] sm:$0x1] }
 0x1fa   : > { %v2278_v39 = vsel %vm3082_vm8, %v2273_v24, %v2277_v59  ;;  %v2217_v28 = vld [vmem:[#allocation4 + $0x38] sm:$0xf]  ;;  %v1698_v32 = vsel %vm3082_vm8, %v1693_v2, %v1697_v62  ;;  %v1706_v31 = vor.u32 %v1705_v10, %v1702_v57  ;;  %v1711_v42 = vrot.slane %v1709_v4, 5  ;;  %v2218_v44 = vld [vmem:[#allocation4 + $0x3c] sm:$0x1] }
 0x1fb   : > { %v2280_v45 = vshrl.u32 %v2215_v20, 16  ;;  %v2719_v49 = vcombine.low %v2264_v11, %v2278_v39  ;;  %v2283_v50 = vshll.u32 %v2215_v20, 16  ;;  %v2289_v51 = vshll.u32 %v2216_v26, 16  ;;  %v1919_v63 = vld [vmem:[#allocation4 + $0x28] sm:$0xf] }
 0x1fc   : > { %2442 = vrot.lane.b32.xlu1 %v2731_v19, %s2901_s8  ;;  %v2294_v33 = vshrl.u32 %v2217_v28, 16  ;;  %v1707_v17 = vrot.slane %v1706_v31, 4  ;;  %v1832_v52 = vsel %vm3402_vm1, %v2688_v14, %v1831_v41  ;;  %v2297_v8 = vshll.u32 %v2217_v28, 16  ;;  %v1920_v53 = vld [vmem:[#allocation4 + $0x2c] sm:$0x1] }
 0x1fd   : > { %2148 = vrot.lane.b32.xlu0 %v2712_v7, %s2900_s30  ;;  %v2282_v21 = vrot.slane %v2280_v45, 4  ;;  %v1836_v18 = vsel %vm3402_vm1, %v2689_v6, %v1835_v30  ;;  %v2285_v13 = vrot.slane %v2283_v50, 5  ;;  %v2303_v19 = vshll.u32 %v2218_v44, 16  ;;  %v1921_v11 = vld [vmem:[#allocation4 + $0x30] sm:$0xf] }
 0x1fe   : > { %v2296_v15 = vrot.slane %v2294_v33, 4  ;;  %v1712_v22 = vsel %vm3082_vm8, %v1707_v17, %v1711_v42  ;;  %v2299_v43 = vrot.slane %v2297_v8, 5  ;;  %v1922_v27 = vld [vmem:[#allocation4 + $0x34] sm:$0x1]  ;;  %v1984_v7 = vshrl.u32 %v1919_v63, 16 }
 0x1ff   : > { %v1987_v25 = vshll.u32 %v1919_v63, 16  ;;  %v2680_v29 = vcombine.low %v1698_v32, %v1712_v22  ;;  %v2286_v34 = vor.u32 %v2285_v13, %v2282_v21  ;;  %v2291_v0 = vrot.slane %v2289_v51, 5  ;;  %v1625_v61 = vld [vmem:[#allocation4 + $0x30] sm:$0xf]  ;;  %v1627_v48 = vld [vmem:[#allocation4 + $0x38] sm:$0xf] }
 0x200   : > { %1853 = vrot.lane.b32.xlu1 %v2692_v40, %s2892_s11  ;;  %v1993_v5 = vshll.u32 %v1920_v53, 16  ;;  %v2300_v55 = vor.u32 %v2299_v43, %v2296_v15  ;;  %v1986_v3 = vrot.slane %v1984_v7, 4  ;;  %v1998_v2 = vshrl.u32 %v1921_v11, 16  ;;  %v1626_v57 = vld [vmem:[#allocation4 + $0x34] sm:$0x1] }
 0x201   : > { %2349 = vrot.lane.b32.xlu0 %v2719_v49, %s2902_s9  ;;  %v1989_v23 = vrot.slane %v1987_v25, 5  ;;  %v2287_v35 = vrot.slane %v2286_v34, 4  ;;  %v2305_v36 = vrot.slane %v2303_v19, 5  ;;  %v2001_v37 = vshll.u32 %v1921_v11, 16  ;;  %v1628_v16 = vld [vmem:[#allocation4 + $0x3c] sm:$0x1] }
 0x202   : > { %v2007_v58 = vshll.u32 %v1922_v27, 16  ;;  %v2301_v1 = vrot.slane %v2300_v55, 4  ;;  %v2000_v9 = vrot.slane %v1998_v2, 4  ;;  %v1714_v40 = vshrl.u32 %v1625_v61, 16  ;;  %v1923_v39 = vld [vmem:[#allocation4 + $0x38] sm:$0xf] }
 0x203   : > { %v1990_v4 = vor.u32 %v1989_v23, %v1986_v3  ;;  %v2693_v24 = vcombine.low %v1832_v52, %v1836_v18  ;;  %v2292_v59 = vsel %vm3082_vm8, %v2287_v35, %v2291_v0  ;;  %v2003_v60 = vrot.slane %v2001_v37, 5  ;;  %v1924_v44 = vld [vmem:[#allocation4 + $0x3c] sm:$0x1]  ;;  %v1925_v45 = vld [vmem:[#allocation4 + $0x40] sm:$0xf] }
 0x204   : > { %2444 = vrot.lane.b32.xlu1 %v2732_v12, %s2901_s8  ;;  %v1717_v62 = vshll.u32 %v1625_v61, 16  ;;  %v1995_v14 = vrot.slane %v1993_v5, 5  ;;  %v2009_v41 = vrot.slane %v2007_v58, 5  ;;  %v1716_v20 = vrot.slane %v1714_v40, 4  ;;  %v1926_v33 = vld [vmem:[#allocation4 + $0x44] sm:$0x1] }
 0x205   : > { %1757 = vrot.lane.b32.xlu0 %v2680_v29, %s2895_s14  ;;  %v1991_v10 = vrot.slane %v1990_v4, 4  ;;  %v2306_v6 = vsel %vm3082_vm8, %v2301_v1, %v2305_v36  ;;  %v2004_v30 = vor.u32 %v2003_v60, %v2000_v9  ;;  %v1728_v26 = vshrl.u32 %v1627_v48, 16  ;;  %v2080_v8 = vld [vmem:[#allocation4 + $0x38] sm:$0xe]  ;;  %v2081_v19 = vld [vmem:[#allocation4 + $0x3c] sm:$0x1] }
 0x206   : > { %v1719_v12 = vrot.slane %v1717_v62, 5  ;;  %v2720_v28 = vcombine.low %v2292_v59, %v2306_v6  ;;  %v1723_v32 = vshll.u32 %v1626_v57, 16  ;;  %v1731_v31 = vshll.u32 %v1627_v48, 16  ;;  %v2082_v7 = vld [vmem:[#allocation4 + $0x40] sm:$0xe] }
 0x207   : > { %v1737_v42 = vshll.u32 %v1628_v16, 16  ;;  %v2005_v49 = vrot.slane %v2004_v30, 4  ;;  %v1730_v51 = vrot.slane %v1728_v26, 4  ;;  %v2012_v63 = vshrl.u32 %v1923_v39, 16  ;;  %v2083_v25 = vld [vmem:[#allocation4 + $0x44] sm:$0x1] }
 0x208   : > { %1855 = vrot.lane.b32.xlu1 %v2693_v24, %s2892_s11  ;;  %v1720_v50 = vor.u32 %v1719_v12, %v1716_v20  ;;  %v1996_v17 = vsel %vm3082_vm8, %v1991_v10, %v1995_v14  ;;  %v1733_v52 = vrot.slane %v1731_v31, 5  ;;  %v2015_v21 = vshll.u32 %v1923_v39, 16  ;;  %v2219_v61 = vld [vmem:[#allocation4 + $0x40] sm:$0xf]  ;;  %v2220_v35 = vld [vmem:[#allocation4 + $0x44] sm:$0x1] }
 0x209   : > { %2351 = vrot.lane.b32.xlu0 %v2720_v28, %s2902_s9  ;;  %v2010_v53 = vsel %vm3082_vm8, %v2005_v49, %v2009_v41  ;;  %v2014_v13 = vrot.slane %v2012_v63, 4  ;;  %v2026_v15 = vshrl.u32 %v1925_v45, 16  ;;  %v1725_v22 = vrot.slane %v1723_v32, 5  ;;  %v2378_v4 = vld [vmem:[#allocation4 + $0x48] sm:$0xe] }
 0x20a   : > { %v1721_v18 = vrot.slane %v1720_v50, 4  ;;  %v2700_v11 = vcombine.low %v1996_v17, %v2010_v53  ;;  %v1734_v43 = vor.u32 %v1733_v52, %v1730_v51  ;;  %v2017_v27 = vrot.slane %v2015_v21, 5  ;;  %v2880_v24 = vld [vmem:[#allocation4 + $0x20] ss:$8 sps:$4 sm:$0xff]   ;;  %v2881_v62 = vld [vmem:[#allocation4 + $0x30] ss:$8 sps:$4 sm:$0xff]  }
 0x20b   : > { %v1739_v29 = vrot.slane %v1737_v42, 5  ;;  %v2021_v34 = vshll.u32 %v1924_v44, 16  ;;  %v2028_v0 = vrot.slane %v2026_v15, 4  ;;  %v2029_v5 = vshll.u32 %v1925_v45, 16  ;;  %v2379_v39 = vld [vmem:[#allocation4 + $0x4c] sm:$0x1] }
 0x20c   : > { %2055 = vrot.lane.b32.xlu1 %v2700_v11, %s2897_s20  ;;  %v1726_v55 = vsel %vm3082_vm8, %v1721_v18, %v1725_v22  ;;  %v1735_v3 = vrot.slane %v1734_v43, 4  ;;  %v2018_v23 = vor.u32 %v2017_v27, %v2014_v13  ;;  %v2035_v2 = vshll.u32 %v1926_v33, 16  ;;  %1611 = vst.msk [vmem:[#allocation3 + $0x10] sm:$0xff] %vm1608_vm2, %v2880_v24  ;;  %v2376_v28 = vld [vmem:[#allocation4 + $0x40] sm:$0xe]  ;;  %1612 = vst.msk [vmem:[#allocation3 + $0x18] sm:$0xff] %vm1608_vm2, %v2881_v62 }
 0x20d   : > { %v2031_v36 = vrot.slane %v2029_v5, 5  ;;  %v2708_v37 = vrot.slane %v2080_v8, 9  ;;  %v2709_v58 = vrot.slane %v2082_v7, 9  ;;  %v2130_v1 = vrot.slane %v2083_v25, 5  ;;  %v2377_v31 = vld [vmem:[#allocation4 + $0x44] sm:$0x1] }
 0x20e   : > { %v1740_v9 = vsel %vm3082_vm8, %v1735_v3, %v1739_v29  ;;  %v2126_v48 = vrot.slane %v2081_v19, 5  ;;  %v2308_v40 = vshrl.u32 %v2219_v61, 16  ;;  %v2019_v60 = vrot.slane %v2018_v23, 4  ;;  %v2877_v53 = vld [vmem:[#allocation4 + $0x40] ss:$8 sps:$4 sm:$0xff]  }
 0x20f   : > { %v2681_v59 = vcombine.low %v1726_v55, %v1740_v9  ;;  %v2032_v57 = vor.u32 %v2031_v36, %v2028_v0  ;;  %v2311_v16 = vshll.u32 %v2219_v61, 16  ;;  %v2023_v10 = vrot.slane %v2021_v34, 5 }
 0x210   : > { %v2131_v14 = vsel %vm3402_vm1, %v2709_v58, %v2130_v1  ;;  %v2310_v41 = vrot.slane %v2308_v40, 4  ;;  %v2333_v20 = vrot.slane %v2331_v46, 5  ;;  %v2037_v30 = vrot.slane %v2035_v2, 5 }
 0x211   : > { %1759 = vrot.lane.b32.xlu0 %v2681_v59, %s2895_s14  ;;  %v2033_v6 = vrot.slane %v2032_v57, 4  ;;  %v2313_v12 = vrot.slane %v2311_v16, 5  ;;  %v2317_v26 = vshll.u32 %v2220_v35, 16  ;;  %v2127_v32 = vsel %vm3402_vm1, %v2708_v37, %v2126_v48  ;;  %s2585_s14 = sshll.u32 %s3749_s25, 3 }
 0x212   : > { %v2729_v42 = vrot.slane %v2378_v4, 9  ;;  %v2024_v54 = vsel %vm3082_vm8, %v2019_v60, %v2023_v10  ;;  %v2713_v44 = vcombine.low %v2127_v32, %v2131_v14  ;;  %v2334_v50 = vsel %vm3082_vm8, %v3454_v56, %v2333_v20  ;;  %s276_s17 = scalar_lea.vmem %s3737_s7, %s2585_s14 }
 0x213   : > { %v2038_v46 = vsel %vm3082_vm8, %v2033_v6, %v2037_v30  ;;  %v2314_v45 = vor.u32 %v2313_v12, %v2310_v41  ;;  %v2728_v51 = vrot.slane %v2376_v28, 9  ;;  %v2426_v33 = vrot.slane %v2379_v39, 5 }
 0x214   : > { %v2701_v49 = vcombine.low %v2024_v54, %v2038_v46  ;;  %v2319_v17 = vrot.slane %v2317_v26, 5  ;;  %v2422_v52 = vrot.slane %v2377_v31, 5  ;;  %v2903_v21 = vmov 0.0   ;;  %v2457_v26 = vld [vmem:[%s3735_s5] sm:$0xf] }
 0x215   : > { %2150 = vrot.lane.b32.xlu0 %v2713_v44, %s2900_s30  ;;  %v2315_v63 = vrot.slane %v2314_v45, 4  ;;  %2829 = vmatprep.subr.bf16.mxu1 %v2903_v21  ;;  %v2427_v13 = vsel %vm3402_vm1, %v2729_v42, %v2426_v33  ;;  %vm2904_vm6 = vmmov 0   ;;  %vm1906_vm10 = vcmask 261312  }
 0x216   : > { %2057 = vrot.lane.b32.xlu1 %v2701_v49, %s2897_s20  ;;  %v2423_v56 = vsel %vm3402_vm1, %v2728_v51, %v2422_v52  ;;  %2837 = vmatprep.mubr.msk.bf16.mxu1 %vm2904_vm6, %v2903_v21  ;;  %vm2524_vm1 = vcmask 523264  }
 0x217   : > { %v2320_v8 = vsel %vm3082_vm8, %v2315_v63, %v2319_v17  ;;  %v2733_v15 = vcombine.low %v2423_v56, %v2427_v13  ;;  %vm1765_vm8 = vcmask 130112  }
 0x218   : > { %v2721_v18 = vcombine.low %v2320_v8, %v2334_v50 }
 0x21a   : > { %2196 = vrot.lane.b32.xlu1 %v2877_v53, %s2899_s29  ;;  %2353 = vrot.lane.b32.xlu0 %v2721_v18, %s2902_s9 }
 0x21e   : > { %2446 = vrot.lane.b32.xlu1 %v2733_v15, %s2901_s8  ;;  %2465 = vperm.xlu0 %2866, %v2462_v38  }
 0x22d   : > { %v1897_v19 = vpop.permute.xlu0 %1896 }
 0x22e   : > { %v2191_v43 = vpop.permute.xlu1 %2190 }
 0x231   : > { %v1895_v11 = vpop.permute.xlu0 %1894 }
 0x232   : > { %v1850_v7 = vpop.permute.xlu1 %1849 }
 0x235   : > { %v2147_v22 = vpop.permute.xlu0 %2146 }
 0x236   : > { %v2441_v25 = vpop.permute.xlu1 %2440 }
 0x239   : > { %v2145_v47 = vpop.permute.xlu0 %2144 }
 0x23a   : > { %v1852_v29 = vpop.permute.xlu1 %1851 }
 0x240   : > { %v1754_v27 = vpop.permute.xlu0 %1753 }
 0x241   : > { %1766 = vst.msk [vmem:[#allocation3] sm:$0xff] %vm1765_vm8, %v1754_v27 }
 0x242   : > { %1862 = vst.msk [vmem:[#allocation3] sm:$0xff] %vm1861_vm9, %v1850_v7 }
 0x243   : > { %1907 = vst.msk [vmem:[#allocation3] sm:$0xff] %vm1906_vm10, %v1895_v11 }
 0x25e   : > { %v2193_v34 = vpop.permute.xlu1 %2192 }
 0x25f   : > { %v1901_v0 = vpop.permute.xlu0 %1900 }
 0x262   : > { %v2054_v5 = vpop.permute.xlu1 %2053 }
 0x263   : > { %v1899_v61 = vpop.permute.xlu0 %1898 }
 0x266   : > { %v2195_v55 = vpop.permute.xlu1 %2194 }
 0x267   : > { %v2348_v3 = vpop.permute.xlu0 %2347 }
 0x26a   : > { %v2052_v23 = vpop.permute.xlu1 %2051 }
 0x26b   : > { %2064 = vst.msk [vmem:[#allocation3] sm:$0xff] %vm2063_vm11, %v2052_v23  ;;  %v1756_v2 = vpop.permute.xlu0 %1755 }
 0x26c   : > { %2157 = vst.msk [vmem:[#allocation3] sm:$0xff] %vm2156_vm12, %v2145_v47 }
 0x26d   : > { %1767 = vst.msk [vmem:[#allocation3 + $0x8] sm:$0xff] %vm1765_vm8, %v1756_v2 }
 0x26e   : > { %2203 = vst.msk [vmem:[#allocation3] sm:$0xff] %vm2202_vm13, %v2191_v43  ;;  %v2443_v35 = vpop.permute.xlu1 %2442 }
 0x26f   : > { %1863 = vst.msk [vmem:[#allocation3 + $0x8] sm:$0xff] %vm1861_vm9, %v1852_v29  ;;  %v2149_v36 = vpop.permute.xlu0 %2148 }
 0x270   : > { %1908 = vst.msk [vmem:[#allocation3 + $0x8] sm:$0xff] %vm1906_vm10, %v1897_v19 }
 0x271   : > { %2360 = vst.msk [vmem:[#allocation3] sm:$0xff] %vm2359_vm14, %v2348_v3 }
 0x272   : > { %2065 = vst.msk [vmem:[#allocation3 + $0x8] sm:$0xff] %vm2063_vm11, %v2054_v5  ;;  %v1854_v37 = vpop.permute.xlu1 %1853 }
 0x273   : > { %2453 = vst.msk [vmem:[#allocation3] sm:$0xff] %vm2452_vm15, %v2441_v25  ;;  %v2350_v58 = vpop.permute.xlu0 %2349 }
 0x274   : > { %2158 = vst.msk [vmem:[#allocation3 + $0x8] sm:$0xff] %vm2156_vm12, %v2147_v22 }
 0x275   : > { %2204 = vst.msk [vmem:[#allocation3 + $0x8] sm:$0xff] %vm2202_vm13, %v2193_v34 }
 0x276   : > { %2361 = vst.msk [vmem:[#allocation3 + $0x8] sm:$0xff] %vm2359_vm14, %v2350_v58  ;;  %v2445_v1 = vpop.permute.xlu1 %2444 }
 0x277   : > { %2454 = vst.msk [vmem:[#allocation3 + $0x8] sm:$0xff] %vm2452_vm15, %v2443_v35  ;;  %v1758_v9 = vpop.permute.xlu0 %1757 }
 0x278   : > { %1768 = vst.msk [vmem:[#allocation3 + $0x10] sm:$0xff] %vm1765_vm8, %v1758_v9 }
 0x279   : > { %1864 = vst.msk [vmem:[#allocation3 + $0x10] sm:$0xff] %vm1861_vm9, %v1854_v37 }
 0x27a   : > { %v2458_v4 = vld [vmem:[#allocation3] sm:$0xff]  ;;  %1909 = vst.msk [vmem:[#allocation3 + $0x10] sm:$0xff] %vm1906_vm10, %v1899_v61  ;;  %v1856_v40 = vpop.permute.xlu1 %1855 }
 0x27b   : > { %v2473_v48 = vsel %vm2468_vm0, %v2458_v4, 0  ;;  %v2352_v59 = vpop.permute.xlu0 %2351 }
 0x27c   : > { %2830 = vmatpush3.bf16.xpose.msra.mxu1 %v2473_v48 }
 0x27d   : > { %2831 = vmatprep.subr.bf16.mxu1 %v2903_v21 }
 0x27e   : > { %v2459_v24 = vld [vmem:[#allocation3 + $0x8] sm:$0xff]  ;;  %v2056_v60 = vpop.permute.xlu1 %2055 }
 0x27f   : > { %v2476_v57 = vsel %vm2468_vm0, %v2459_v24, 0  ;;  %2066 = vst.msk [vmem:[#allocation3 + $0x10] sm:$0xff] %vm2063_vm11, %v2056_v60 }
 0x280   : > { %2159 = vst.msk [vmem:[#allocation3 + $0x10] sm:$0xff] %vm2156_vm12, %v2149_v36 }
 0x281   : > { %2205 = vst.msk [vmem:[#allocation3 + $0x10] sm:$0xff] %vm2202_vm13, %v2195_v55 }
 0x282   : > { %2362 = vst.msk [vmem:[#allocation3 + $0x10] sm:$0xff] %vm2359_vm14, %v2352_v59 }
 0x283   : > { %2455 = vst.msk [vmem:[#allocation3 + $0x10] sm:$0xff] %vm2452_vm15, %v2445_v1  ;;  %v1760_v16 = vpop.permute.xlu0 %1759 }
 0x284   : > { %2832 = vmatpush3.bf16.xpose.msra.mxu1 %v2476_v57  ;;  %1769 = vst.msk [vmem:[#allocation3 + $0x18] sm:$0xff] %vm1765_vm8, %v1760_v16 }
 0x285   : > { %2833 = vmatprep.subr.bf16.mxu1 %v2903_v21  ;;  %1865 = vst.msk [vmem:[#allocation3 + $0x18] sm:$0xff] %vm1861_vm9, %v1856_v40 }
 0x286   : > { %1910 = vst.msk [vmem:[#allocation3 + $0x18] sm:$0xff] %vm1906_vm10, %v1901_v0 }
 0x287   : > { %v2151_v62 = vpop.permute.xlu0 %2150 }
 0x288   : > { %v2058_v10 = vpop.permute.xlu1 %2057 }
 0x289   : > { %2067 = vst.msk [vmem:[#allocation3 + $0x18] sm:$0xff] %vm2063_vm11, %v2058_v10 }
 0x28a   : > { %2160 = vst.msk [vmem:[#allocation3 + $0x18] sm:$0xff] %vm2156_vm12, %v2151_v62  ;;  %v2460_v14 = vld [vmem:[#allocation3 + $0x10] sm:$0xff] }
 0x28b   : > { %v2479_v41 = vsel %vm2468_vm0, %v2460_v14, 0 }
 0x28c   : > { %v2197_v20 = vpop.permute.xlu1 %2196  ;;  %v2354_v39 = vpop.permute.xlu0 %2353  ;;  %2834 = vmatpush3.bf16.xpose.msra.mxu1 %v2479_v41 }
 0x28d   : > { %2206 = vst.msk [vmem:[#allocation3 + $0x18] sm:$0xff] %vm2202_vm13, %v2197_v20  ;;  %2835 = vmatprep.subr.bf16.mxu1 %v2903_v21 }
 0x28e   : > { %2363 = vst.msk [vmem:[#allocation3 + $0x18] sm:$0xff] %vm2359_vm14, %v2354_v39 }
 0x290   : > { %v2447_v6 = vpop.permute.xlu1 %2446 }
 0x291   : > { %2456 = vst.msk [vmem:[#allocation3 + $0x18] sm:$0xff] %vm2452_vm15, %v2447_v6 }
 0x298   : > { %v2461_v30 = vld [vmem:[#allocation3 + $0x18] sm:$0xff] }
 0x299   : > { %v2482_v12 = vsel %vm2468_vm0, %v2461_v30, 0 }
 0x29a   : > { %2836 = vmatpush3.bf16.xpose.msra.mxu1 %v2482_v12 }
 0x29d   : > { %v2466_v28 = vpop.permute.xlu0 %2465 }
 0x2a1   : > { %2838 = vmatmul.mubr.msk.bf16.vlgmr.msra.gmra.mrb[0].mxu1 %vm2468_vm0, %v2457_v26 }
 0x374   : > { %v2518_v32 = vpop.f32.mrb[0].mxu1 }
 0x375   : > { %v2519_v31 = vadd.f32 %v2518_v32, %v2466_v28  ;;  %v2839_v42 = vpop.f32.mrb[1].mxu1 }
 0x376   : > { %v2521_v54 = vpop.f32.mrb[2].mxu1 }
 0x377   : > { %2525 = vst.msk [vmem:[%s276_s17] sm:$0xff] %vm2524_vm1, %v2519_v31  ;;  %v2840_v46 = vpop.f32.mrb[3].mxu1 }
 0x378 PF: > { %s17_s24 = sadd.s32 1, %s2888_s24  }
 0x379   : > { %p14_p4 = scmp.ge.s32.totalorder %s17_s24, 4  }
 0x37b   :  { %16 = sbr.rel (!%p14_p4) target bundleno = 1 (0x1), region = 81 }

</bundles_post_ra>
